<compile_context>
chip_gen: v7x
topology: tpu7x:2x2x1
jax: 0.10.0
libtpu: 0.0.40
codegen_flags: <defaults>
</compile_context>

<pallas_src>
import functools

import jax
import jax.numpy as jnp
from jax import lax
from jax.experimental import pallas as pl
from jax.experimental.pallas import tpu as pltpu


# -----------------------------------------------------------------------------
# Kernel 1: per-sample ReLU + bilinear pooling + signed-sqrt + L2 normalize.
#   in : (1, C, HWp) block of the activation (HWp = HW zero-padded to 128k)
#   out: (1, C, C)   normalized bilinear feature (bf16)
# -----------------------------------------------------------------------------
def _bilinear_kernel(x_ref, o_ref, *, inv_hw, eps_sqrt, eps_norm_sq):
    x = jnp.maximum(x_ref[0], 0.0)                       # ReLU, (C, HWp) f32
    xb = x.astype(jnp.bfloat16)                          # MXU-native operands
    # Gram matrix on the MXU: contract the HW (last) axis of both operands
    # directly -- no x.T, so no XLU transpose or extra VMEM tile copy.
    g = lax.dot_general(
        xb, xb, (((1,), (1,)), ((), ())),
        preferred_element_type=jnp.float32,
    )                                                    # (C, C) f32 acc
    g = g * inv_hw
    g = jnp.sqrt(g + eps_sqrt)
    # F.normalize(p=2, dim=1) over the flattened C*C vector:
    #   g / max(||g||, 1e-12)  ==  g * rsqrt(max(sum(g^2), 1e-24))
    sumsq = jnp.sum(g * g)
    g = g * lax.rsqrt(jnp.maximum(sumsq, eps_norm_sq))
    o_ref[0] = g.astype(o_ref.dtype)


def bilinear_pool(x_nchw, *, out_dtype=jnp.bfloat16):
    n, c, h, w = x_nchw.shape
    hw = h * w
    x_flat = x_nchw.reshape(n, c, hw)  # free glue reshape (contiguous NCHW)

    # Zero-pad the contraction axis to a multiple of 128 so every lane tile of
    # the gram matmul is full/unmasked (real size: 784 -> 896). Zeros don't
    # change the gram; division stays by the original HW.
    hw_pad = ((hw + 127) // 128) * 128
    if hw_pad != hw:
        x_flat = jnp.pad(x_flat, ((0, 0), (0, 0), (0, hw_pad - hw)))

    kernel = functools.partial(
        _bilinear_kernel, inv_hw=1.0 / hw, eps_sqrt=1e-5, eps_norm_sq=1e-24
    )

    return pl.pallas_call(
        kernel,
        out_shape=jax.ShapeDtypeStruct((n, c, c), out_dtype),
        grid_spec=pltpu.PrefetchScalarGridSpec(
            num_scalar_prefetch=0,
            grid=(n,),
            in_specs=[pl.BlockSpec((1, c, hw_pad), lambda b: (b, 0, 0))],
            out_specs=pl.BlockSpec((1, c, c), lambda b: (b, 0, 0)),
        ),
        compiler_params=pltpu.CompilerParams(
            # Batch axis is parallel: lets v7x shard samples across its 2 TCs.
            dimension_semantics=("parallel",),
        ),
    )(x_flat)


# -----------------------------------------------------------------------------
# Kernel 2: fully-connected layer  score = X @ W^T + b, tiled over D = C*C.
#   X: (N, D) bf16, W: (K, D) bf16 (PyTorch Linear layout, D last => lane-dense
#   DMA, no HBM transpose of the weight).  Grid = (num_splits, D-chunks):
#   leading "parallel" axis over D-halves (uses both v7x TCs), inner
#   "arbitrary" reduction axis; each half accumulates in f32 directly into its
#   VMEM-resident partial (1, N, K) output block.  Bias + partial-sum epilogue
#   is a tiny XLA op.
# -----------------------------------------------------------------------------
def _fc_kernel(x_ref, w_ref, o_ref):
    @pl.when(pl.program_id(1) == 0)
    def _():
        o_ref[...] = jnp.zeros_like(o_ref)

    # Contract the shared D-chunk (last dim of both operands): no weight
    # transpose is ever materialized, DMA stays lane-dense in D.
    o_ref[0] += lax.dot_general(
        x_ref[...], w_ref[...], (((1,), (1,)), ((), ())),
        preferred_element_type=jnp.float32,
    )


def fc(x, w, b, *, tk=8192, num_splits=2):
    # x: (N, D), w: (K, D) (PyTorch Linear convention), b: (K,)
    n, d = x.shape
    k = w.shape[0]

    if d % num_splits != 0:
        num_splits = 1
    d_split = d // num_splits
    tk = min(tk, d_split)
    assert d_split % tk == 0, (d, num_splits, tk)
    chunks = d_split // tk

    # bf16 streams, f32 accumulation: FC is weight-HBM-bound at real size, so
    # halving weight bytes ~halves its wall time on every generation.
    x_bf = x.astype(jnp.bfloat16)
    w_bf = w.astype(jnp.bfloat16)

    # Explicit, generation-aware VMEM budget: double-buffered bf16 input tiles
    # + partial output tiles, with headroom.  (Real size K=200, tk=8192 bf16:
    # ~6.6 MB of weight buffers -- fits v7x's 64 MiB physical and v5e's small
    # scoped default comfortably.)
    step_bytes = 2 * (n * tk + k * tk) * 2 + 2 * n * k * 4
    vmem_limit = max(int(step_bytes * 1.5) + (2 << 20), 16 << 20)

    cost = pl.CostEstimate(
        flops=2 * n * d * k,
        transcendentals=0,
        bytes_accessed=2 * (n * d + k * d) + 4 * (num_splits * n * k + n * k + k),
    )

    partial = pl.pallas_call(
        _fc_kernel,
        out_shape=jax.ShapeDtypeStruct((num_splits, n, k), jnp.float32),
        grid_spec=pltpu.PrefetchScalarGridSpec(
            num_scalar_prefetch=0,
            grid=(num_splits, chunks),
            in_specs=[
                # activations chunk (N, TK)
                pl.BlockSpec((n, tk), lambda p, i: (0, p * chunks + i)),
                # weight chunk (K, TK), lane-dense in D
                pl.BlockSpec((k, tk), lambda p, i: (0, p * chunks + i)),
            ],
            out_specs=pl.BlockSpec((1, n, k), lambda p, i: (p, 0, 0)),
        ),
        compiler_params=pltpu.CompilerParams(
            dimension_semantics=("parallel", "arbitrary"),
            vmem_limit_bytes=vmem_limit,
        ),
        cost_estimate=cost,
    )(x_bf, w_bf)

    # Tiny epilogue: combine the per-half partials and add the bias.
    return jnp.sum(partial, axis=0) + b.reshape(1, k)


# -----------------------------------------------------------------------------
# Full BCNN forward (fc phase, _is_all=False)
# -----------------------------------------------------------------------------
# TODO(synk): the _is_all=True path (pretrained VGG16 feature extractor) is a
# full CNN backbone and is not reimplemented here.
def bcnn_forward(x_nchw, fc_weight, fc_bias):
    n, c, _, _ = x_nchw.shape
    g = bilinear_pool(x_nchw)          # (N, C, C) bf16, sqrt'd & L2-normalized
    g_flat = g.reshape(n, c * c)       # free glue reshape (contiguous)
    return fc(g_flat, fc_weight, fc_bias)


def bcnn_reference(x_nchw, fc_weight, fc_bias):
    """Pure-JAX f32 reference mirroring the PyTorch forward."""
    n, c, h, w = x_nchw.shape
    hw = h * w
    x = jnp.maximum(x_nchw, 0.0).reshape(n, c, hw)
    g = jnp.einsum("ncp,ndp->ncd", x, x) / hw
    g = g.reshape(n, c * c)
    g = jnp.sqrt(g + 1e-5)
    norm = jnp.sqrt(jnp.sum(g * g, axis=1, keepdims=True))
    g = g / jnp.maximum(norm, 1e-12)
    return g @ fc_weight.T + fc_bias


if __name__ == "__main__":
    # Small shapes consistent with the module structure
    # (real module: N, 512, 28, 28 and 200 classes).
    N, C, H, W = 2, 128, 8, 8
    NUM_CLASSES = 16

    key = jax.random.PRNGKey(0)
    kx, kw = jax.random.split(key)

    x = jax.random.normal(kx, (N, C, H, W), dtype=jnp.float32)
    # Deterministic synthetic Linear params (PyTorch: weight (out, in), bias 0).
    fc_weight = jax.random.normal(kw, (NUM_CLASSES, C * C), dtype=jnp.float32) * 0.01
    fc_bias = jnp.zeros((NUM_CLASSES,), dtype=jnp.float32)

    fwd = jax.jit(bcnn_forward)
    out = jax.block_until_ready(fwd(x, fc_weight, fc_bias))
    ref = jax.block_until_ready(bcnn_reference(x, fc_weight, fc_bias))

    assert out.shape == (N, NUM_CLASSES)
    # bf16 matmul operands (f32 accumulation) => loosened tolerance vs. the
    # pure-f32 reference; estimated error is ~1e-4 abs on ~1e-2 outputs.
    assert jnp.allclose(out, ref, atol=2e-3, rtol=2e-2), "mismatch vs reference"

    print("KERNEL_OK")
</pallas_src>

<mosaic_0001>
module attributes {stable_mosaic.version = 11 : i64} {
  func.func @_bilinear_kernel(%arg0: i32, %arg1: memref<1x128x128xf32, #tpu.memory_space<vmem>>, %arg2: memref<1x128x128xbf16, #tpu.memory_space<vmem>>) attributes {dimension_semantics = [#tpu.dimension_semantics<parallel>], iteration_bounds = array<i64: 2>, scalar_prefetch = 0 : i64, scratch_operands = 0 : i64, tpu.core_type = #tpu.core_type<tc>, window_params = [{transform_indices = @transform_0, window_bounds = array<i64: 1, 128, 128>}, {transform_indices = @transform_1, window_bounds = array<i64: 1, 128, 128>}]} {
    %c0 = arith.constant 0 : index
    %c0_0 = arith.constant 0 : index
    %c0_1 = arith.constant 0 : index
    %0 = vector.load %arg1[%c0, %c0_0, %c0_1] : memref<1x128x128xf32, #tpu.memory_space<vmem>>, vector<1x128x128xf32>
    %1 = vector.shape_cast %0 : vector<1x128x128xf32> to vector<128x128xf32>
    %cst = arith.constant 0.000000e+00 : f32
    %2 = vector.broadcast %cst : f32 to vector<128x128xf32>
    %3 = arith.maximumf %1, %2 : vector<128x128xf32>
    %4 = arith.truncf %3 : vector<128x128xf32> to vector<128x128xbf16>
    %cst_2 = arith.constant dense<0.000000e+00> : vector<128x128xf32>
    %5 = tpu.matmul %4, %4, %cst_2 {dimension_numbers = #tpu.dot_dimension_numbers<[1], [1], [0], [0], [0, 0, 1, 0], [], []>} : vector<128x128xbf16>, vector<128x128xbf16>, vector<128x128xf32> -> vector<128x128xf32>
    %cst_3 = arith.constant 1.562500e-02 : f32
    %6 = vector.broadcast %cst_3 : f32 to vector<128x128xf32>
    %7 = arith.mulf %5, %6 : vector<128x128xf32>
    %cst_4 = arith.constant 9.99999974E-6 : f32
    %8 = vector.broadcast %cst_4 : f32 to vector<128x128xf32>
    %9 = arith.addf %7, %8 : vector<128x128xf32>
    %10 = math.sqrt %9 : vector<128x128xf32>
    %11 = arith.mulf %10, %10 : vector<128x128xf32>
    %12 = vector.shape_cast %11 : vector<128x128xf32> to vector<1x128x128xf32>
    %cst_5 = arith.constant dense<0.000000e+00> : vector<1xf32>
    %13 = vector.multi_reduction <add>, %12, %cst_5 [1, 2] : vector<1x128x128xf32> to vector<1xf32>
    %14 = vector.shape_cast %13 : vector<1xf32> to vector<1x1x1xf32>
    %15 = vector.extract %14[0, 0, 0] : f32 from vector<1x1x1xf32>
    %cst_6 = arith.constant 1.000000e-24 : f32
    %16 = arith.maximumf %15, %cst_6 : f32
    %17 = math.rsqrt %16 : f32
    %18 = vector.broadcast %17 : f32 to vector<128x128xf32>
    %19 = arith.mulf %10, %18 : vector<128x128xf32>
    %20 = arith.truncf %19 : vector<128x128xf32> to vector<128x128xbf16>
    %c0_7 = arith.constant 0 : index
    %c0_8 = arith.constant 0 : index
    %c0_9 = arith.constant 0 : index
    %21 = vector.load %arg2[%c0_7, %c0_8, %c0_9] : memref<1x128x128xbf16, #tpu.memory_space<vmem>>, vector<1x128x128xbf16>
    %22 = vector.shape_cast %21 : vector<1x128x128xbf16> to vector<128x128xbf16>
    %23 = vector.shape_cast %20 : vector<128x128xbf16> to vector<1x128x128xbf16>
    tpu.vector_store %arg2[%c0_7, %c0_8, %c0_9], %23 {strides = array<i32>} : memref<1x128x128xbf16, #tpu.memory_space<vmem>>, vector<1x128x128xbf16>,
    return
  }
  func.func @transform_0(%arg0: i32) -> (i32, i32, i32) {
    %c0_i32 = arith.constant 0 : i32
    %c0_i32_0 = arith.constant 0 : i32
    %c0_i32_1 = arith.constant 0 : i32
    return %arg0, %c0_i32, %c0_i32_0 : i32, i32, i32
  }
  func.func @transform_1(%arg0: i32) -> (i32, i32, i32) {
    %c0_i32 = arith.constant 0 : i32
    %c0_i32_0 = arith.constant 0 : i32
    %c0_i32_1 = arith.constant 0 : i32
    return %arg0, %c0_i32, %c0_i32_0 : i32, i32, i32
  }
}

module attributes {stable_mosaic.version = 11 : i64} {
  func.func @_fc_kernel(%arg0: i32, %arg1: i32, %arg2: memref<2x8192xbf16, #tpu.memory_space<vmem>>, %arg3: memref<16x8192xbf16, #tpu.memory_space<vmem>>, %arg4: memref<1x2x16xf32, #tpu.memory_space<vmem>>) attributes {dimension_semantics = [#tpu.dimension_semantics<parallel>, #tpu.dimension_semantics<arbitrary>], iteration_bounds = array<i64: 2, 1>, scalar_prefetch = 0 : i64, scratch_operands = 0 : i64, tpu.core_type = #tpu.core_type<tc>, window_params = [{transform_indices = @transform_0, window_bounds = array<i64: 2, 8192>}, {transform_indices = @transform_1, window_bounds = array<i64: 16, 8192>}, {transform_indices = @transform_2, window_bounds = array<i64: 1, 2, 16>}]} {
    %c0_i32 = arith.constant 0 : i32
    %0 = arith.cmpi eq, %arg1, %c0_i32 : i32
    %1 = arith.extui %0 : i1 to i32
    %c0_i32_0 = arith.constant 0 : i32
    %2 = arith.cmpi ne, %1, %c0_i32_0 : i32
    scf.if %2 {
      %cst_10 = arith.constant 0.000000e+00 : f32
      %12 = vector.broadcast %cst_10 : f32 to vector<1x2x16xf32>
      %c0_11 = arith.constant 0 : index
      %c0_12 = arith.constant 0 : index
      %c0_13 = arith.constant 0 : index
      %13 = vector.load %arg4[%c0_11, %c0_12, %c0_13] : memref<1x2x16xf32, #tpu.memory_space<vmem>>, vector<1x2x16xf32>
      tpu.vector_store %arg4[%c0_11, %c0_12, %c0_13], %12 {strides = array<i32>} : memref<1x2x16xf32, #tpu.memory_space<vmem>>, vector<1x2x16xf32>,
    } else {
    }
    %c0 = arith.constant 0 : index
    %c0_1 = arith.constant 0 : index
    %c0_2 = arith.constant 0 : index
    %3 = vector.load %arg4[%c0, %c0_1, %c0_2] : memref<1x2x16xf32, #tpu.memory_space<vmem>>, vector<1x2x16xf32>
    %4 = vector.shape_cast %3 : vector<1x2x16xf32> to vector<2x16xf32>
    %c0_3 = arith.constant 0 : index
    %c0_4 = arith.constant 0 : index
    %5 = vector.load %arg2[%c0_3, %c0_4] : memref<2x8192xbf16, #tpu.memory_space<vmem>>, vector<2x8192xbf16>
    %c0_5 = arith.constant 0 : index
    %c0_6 = arith.constant 0 : index
    %6 = vector.load %arg3[%c0_5, %c0_6] : memref<16x8192xbf16, #tpu.memory_space<vmem>>, vector<16x8192xbf16>
    %cst = arith.constant dense<0.000000e+00> : vector<2x16xf32>
    %7 = tpu.matmul %5, %6, %cst {dimension_numbers = #tpu.dot_dimension_numbers<[1], [1], [0], [0], [0, 0, 1, 0], [], []>} : vector<2x8192xbf16>, vector<16x8192xbf16>, vector<2x16xf32> -> vector<2x16xf32>
    %8 = arith.addf %4, %7 : vector<2x16xf32>
    %c0_7 = arith.constant 0 : index
    %c0_8 = arith.constant 0 : index
    %c0_9 = arith.constant 0 : index
    %9 = vector.load %arg4[%c0_7, %c0_8, %c0_9] : memref<1x2x16xf32, #tpu.memory_space<vmem>>, vector<1x2x16xf32>
    %10 = vector.shape_cast %9 : vector<1x2x16xf32> to vector<2x16xf32>
    %11 = vector.shape_cast %8 : vector<2x16xf32> to vector<1x2x16xf32>
    tpu.vector_store %arg4[%c0_7, %c0_8, %c0_9], %11 {strides = array<i32>} : memref<1x2x16xf32, #tpu.memory_space<vmem>>, vector<1x2x16xf32>,
    return
  }
  func.func @transform_0(%arg0: i32, %arg1: i32) -> (i32, i32) {
    %c1_i32 = arith.constant 1 : i32
    %0 = arith.muli %arg0, %c1_i32 : i32
    %1 = arith.addi %0, %arg1 : i32
    %c0_i32 = arith.constant 0 : i32
    %c0_i32_0 = arith.constant 0 : i32
    return %c0_i32, %1 : i32, i32
  }
  func.func @transform_1(%arg0: i32, %arg1: i32) -> (i32, i32) {
    %c1_i32 = arith.constant 1 : i32
    %0 = arith.muli %arg0, %c1_i32 : i32
    %1 = arith.addi %0, %arg1 : i32
    %c0_i32 = arith.constant 0 : i32
    %c0_i32_0 = arith.constant 0 : i32
    return %c0_i32, %1 : i32, i32
  }
  func.func @transform_2(%arg0: i32, %arg1: i32) -> (i32, i32, i32) {
    %c0_i32 = arith.constant 0 : i32
    %c0_i32_0 = arith.constant 0 : i32
    %c0_i32_1 = arith.constant 0 : i32
    return %arg0, %c0_i32, %c0_i32_0 : i32, i32, i32
  }
}

</mosaic_0001>

<bundles_post_ra>
// kernel: bcnn_forward.2
= control target key start
LH: loop header
LB: loop body
LE: loop exit
PB: predicated region body
PF: predicated region fallthrough
CT: control target
= control target key end

     0   :  { %s817_s6 = smov 0   ;;  %s1050_s0 = inlined_call_operand.vmem [shape: f32[2,128,128], index: 0, kind: input, shape index: {}]   ;;  %s1051_s1 = inlined_call_operand.vmem [shape: bf16[2,128,128], index: 1, kind: output, shape index: {}]  }
   0x1 LB: > { %s595_s7 = sadd.s32 4294967295, %s804_s6   ;;  %p599_p0 = scmp.ge.s32.totalorder %s804_s6, 1  ;;  %s804_s6 = sphi %s817_s6, %s11_s6  }
   0x2   : > { %p87_p1 = scmp.lt.s32.totalorder %s804_s6, 3 }
   0x4   : > { %p88_p2 = pnand %p599_p0, %p87_p1 }
   0x5   : > { %p107_p3 = scmp.lt.s32.totalorder (!%p88_p2), %s595_s7, 1  ;;  %s806_s13 = smov (!%p88_p2), 1e-24  }
   0x6   : > { %91 = sbr.rel (%p88_p2) target bundleno = 629 (0x275), region = 24 }
   0xd   : > { %s1053_s7 = smov (!%p107_p3, %s595_s7), 1 }
   0xe   : > { %s622_s8 = sshll.u32 %s1053_s7, 7  ;;  %s623_s16 = sshll.u32 %s1053_s7, 6 }
   0xf   : > { %s831_s11 = scalar_lea.vmem %s1050_s0, %s622_s8  ;;  %s116_s19 = scalar_lea.vmem %s1051_s1, %s623_s16 }
  0x10   : > { %v118_v0 = vld [vmem:[%s831_s11] sm:$0xff]  ;;  %v119_v1 = vld [vmem:[%s831_s11 + $0x8] sm:$0xff]  ;;  %v120_v2 = vld [vmem:[%s831_s11 + $0x10] sm:$0xff] }
  0x11   : > { %v134_v3 = vmax.f32 %v118_v0, 0.0  ;;  %v135_v4 = vmax.f32 %v119_v1, 0.0  ;;  %v121_v5 = vld [vmem:[%s831_s11 + $0x18] sm:$0xff]  ;;  %v136_v6 = vmax.f32 %v120_v2, 0.0  ;;  %v126_v8 = vld [vmem:[%s831_s11 + $0x40] sm:$0xff]  ;;  %v127_v10 = vld [vmem:[%s831_s11 + $0x48] sm:$0xff] }
  0x12   : > { %v137_v7 = vmax.f32 %v121_v5, 0.0  ;;  %v142_v11 = vmax.f32 %v126_v8, 0.0  ;;  %v122_v13 = vld [vmem:[%s831_s11 + $0x20] sm:$0xff]  ;;  %v123_v14 = vld [vmem:[%s831_s11 + $0x28] sm:$0xff]  ;;  %v143_v15 = vmax.f32 %v127_v10, 0.0  ;;  %v124_v20 = vld [vmem:[%s831_s11 + $0x30] sm:$0xff] }
  0x13   : > { %v150_v9 = vpack.c.bf16 %v135_v4, %v134_v3  ;;  %v138_v17 = vmax.f32 %v122_v13, 0.0  ;;  %v139_v18 = vmax.f32 %v123_v14, 0.0  ;;  %v125_v21 = vld [vmem:[%s831_s11 + $0x38] sm:$0xff]  ;;  %v140_v22 = vmax.f32 %v124_v20, 0.0  ;;  %v128_v25 = vld [vmem:[%s831_s11 + $0x50] sm:$0xff]  ;;  %v130_v30 = vld [vmem:[%s831_s11 + $0x60] sm:$0xff] }
  0x14   : > { %v151_v12 = vpack.c.bf16 %v137_v7, %v136_v6  ;;  %v154_v16 = vpack.c.bf16 %v143_v15, %v142_v11  ;;  %v141_v23 = vmax.f32 %v125_v21, 0.0  ;;  %v129_v26 = vld [vmem:[%s831_s11 + $0x58] sm:$0xff]  ;;  %v144_v27 = vmax.f32 %v128_v25, 0.0  ;;  %v131_v31 = vld [vmem:[%s831_s11 + $0x68] sm:$0xff]  ;;  %v132_v35 = vld [vmem:[%s831_s11 + $0x70] sm:$0xff] }
  0x15   : > { %703 = vmatprep.subr.bf16.mxu0 %v150_v9  ;;  %735 = vmatprep.subr.bf16.mxu1 %v150_v9  ;;  %v152_v19 = vpack.c.bf16 %v139_v18, %v138_v17  ;;  %v145_v28 = vmax.f32 %v129_v26, 0.0  ;;  %v146_v32 = vmax.f32 %v130_v30, 0.0  ;;  %v147_v33 = vmax.f32 %v131_v31, 0.0  ;;  %v133_v36 = vld [vmem:[%s831_s11 + $0x78] sm:$0xff] }
  0x16   : > { %704 = vmatpush3.bf16.xpose.msra.mxu0 %v150_v9  ;;  %743 = vmatpush3.bf16.xpose.msra.mxu1 %v150_v9  ;;  %v153_v24 = vpack.c.bf16 %v141_v23, %v140_v22  ;;  %v148_v37 = vmax.f32 %v132_v35, 0.0  ;;  %v149_v38 = vmax.f32 %v133_v36, 0.0 }
  0x17   : > { %705 = vmatprep.subr.bf16.mxu0 %v151_v12  ;;  %736 = vmatprep.subr.bf16.mxu1 %v151_v12  ;;  %v155_v29 = vpack.c.bf16 %v145_v28, %v144_v27  ;;  %v156_v34 = vpack.c.bf16 %v147_v33, %v146_v32 }
  0x18   : > { %719 = vmatprep.mubr.bf16.mxu0 %v150_v9  ;;  %727 = vmatprep.mubr.bf16.mxu1 %v154_v16  ;;  %v157_v39 = vpack.c.bf16 %v149_v38, %v148_v37 }
  0x1e   : > { %706 = vmatpush3.bf16.xpose.msra.mxu0 %v151_v12  ;;  %744 = vmatpush3.bf16.xpose.msra.mxu1 %v151_v12 }
  0x1f   : > { %707 = vmatprep.subr.bf16.mxu0 %v152_v19  ;;  %737 = vmatprep.subr.bf16.mxu1 %v152_v19 }
  0x26   : > { %708 = vmatpush3.bf16.xpose.msra.mxu0 %v152_v19  ;;  %745 = vmatpush3.bf16.xpose.msra.mxu1 %v152_v19 }
  0x27   : > { %709 = vmatprep.subr.bf16.mxu0 %v153_v24  ;;  %738 = vmatprep.subr.bf16.mxu1 %v153_v24 }
  0x2e   : > { %710 = vmatpush3.bf16.xpose.msra.mxu0 %v153_v24  ;;  %746 = vmatpush3.bf16.xpose.msra.mxu1 %v153_v24 }
  0x2f   : > { %711 = vmatprep.subr.bf16.mxu0 %v154_v16  ;;  %739 = vmatprep.subr.bf16.mxu1 %v154_v16 }
  0x36   : > { %712 = vmatpush3.bf16.xpose.msra.mxu0 %v154_v16  ;;  %747 = vmatpush3.bf16.xpose.msra.mxu1 %v154_v16 }
  0x37   : > { %713 = vmatprep.subr.bf16.mxu0 %v155_v29  ;;  %740 = vmatprep.subr.bf16.mxu1 %v155_v29 }
  0x3e   : > { %714 = vmatpush3.bf16.xpose.msra.mxu0 %v155_v29  ;;  %748 = vmatpush3.bf16.xpose.msra.mxu1 %v155_v29 }
  0x3f   : > { %715 = vmatprep.subr.bf16.mxu0 %v156_v34  ;;  %741 = vmatprep.subr.bf16.mxu1 %v156_v34 }
  0x46   : > { %716 = vmatpush3.bf16.xpose.msra.mxu0 %v156_v34  ;;  %749 = vmatpush3.bf16.xpose.msra.mxu1 %v156_v34 }
  0x47   : > { %717 = vmatprep.subr.bf16.mxu0 %v157_v39  ;;  %742 = vmatprep.subr.bf16.mxu1 %v157_v39 }
  0x4e   : > { %718 = vmatpush3.bf16.xpose.msra.mxu0 %v157_v39  ;;  %750 = vmatpush3.bf16.xpose.msra.mxu1 %v157_v39 }
  0x55   : > { %720 = vmatmul.mubr.bf16.vlgmr.msra.gmra.mrb[0].mxu0 %v151_v12  ;;  %728 = vmatmul.mubr.bf16.vlgmr.msra.gmra.mrb[0].mxu1 %v155_v29 }
  0x56   : > { %723 = vmatprep.mubr.bf16.mxu0 %v152_v19  ;;  %731 = vmatprep.mubr.bf16.mxu1 %v156_v34 }
  0x5d   : > { %724 = vmatmul.mubr.bf16.gmra.mrb[4].mxu0 %v153_v24  ;;  %732 = vmatmul.mubr.bf16.gmra.mrb[4].mxu1 %v157_v39 }
 0x128   : > { %v721_v40 = vpop.f32.mrb[0].mxu0  ;;  %v729_v41 = vpop.f32.mrb[0].mxu1 }
 0x129   : > { %v192_v42 = vpop.f32.mrb[1].mxu0  ;;  %v224_v43 = vpop.f32.mrb[1].mxu1  ;;  %v257_v49 = vmul.f32 0.015625, %v721_v40  ;;  %v265_v7 = vmul.f32 0.015625, %v729_v41 }
 0x12a   : > { %v722_v44 = vpop.f32.mrb[2].mxu0  ;;  %v730_v45 = vpop.f32.mrb[2].mxu1  ;;  %v255_v46 = vmul.f32 0.015625, %v192_v42  ;;  %v263_v5 = vmul.f32 0.015625, %v224_v43 }
 0x12b   : > { %v195_v47 = vpop.f32.mrb[3].mxu0  ;;  %v227_v48 = vpop.f32.mrb[3].mxu1  ;;  %v258_v55 = vmul.f32 0.015625, %v722_v44  ;;  %v851_v58 = vadd.f32 1e-05, %v257_v49  ;;  %v266_v18 = vmul.f32 0.015625, %v730_v45 }
 0x12c   : > { %v849_v50 = vadd.f32 1e-05, %v255_v46  ;;  %v256_v51 = vmul.f32 0.015625, %v195_v47  ;;  %v264_v10 = vmul.f32 0.015625, %v227_v48  ;;  %v869_v13 = vadd.f32 1e-05, %v263_v5 }
 0x12d   : > { %v856_v0 = vadd.f32 1e-05, %v258_v55  ;;  %v872_v16 = vadd.f32 1e-05, %v265_v7  ;;  %vm303_vm0 = vcmp.eq.f32.partialorder %v851_v58, inf  ;;  %vm305_vm1 = vcmp.eq.f32.partialorder %v851_v58, 0.0 }
 0x12e   : > { %v272_v59 = vadd.f32 1e-05, %v256_v51  ;;  %764 = vrsqrt.f32 %v849_v50  ;;  %v878_v19 = vadd.f32 1e-05, %v264_v10  ;;  %v306_v22 = vand.u32 2147483648, %v851_v58 }
 0x12f   : > { %vm289_vm3 = vcmp.eq.f32.partialorder %v849_v50, inf  ;;  %v292_v28 = vand.u32 2147483648, %v849_v50  ;;  %v888_v29 = vadd.f32 1e-05, %v266_v18  ;;  %vm291_vm5 = vcmp.eq.f32.partialorder %v849_v50, 0.0 }
 0x130   : > { %v725_v52 = vpop.f32.mrb[4].mxu0  ;;  %v733_v53 = vpop.f32.mrb[4].mxu1  ;;  %766 = vrsqrt.f32 %v272_v59  ;;  %vm296_vm2 = vcmp.eq.f32.partialorder %v272_v59, inf  ;;  %v299_v25 = vand.u32 2147483648, %v272_v59  ;;  %vm298_vm4 = vcmp.eq.f32.partialorder %v272_v59, 0.0 }
 0x131   : > { %v208_v54 = vpop.f32.mrb[5].mxu0  ;;  %v240_v56 = vpop.f32.mrb[5].mxu1  ;;  %768 = vrsqrt.f32 %v851_v58  ;;  %v261_v1 = vmul.f32 0.015625, %v725_v52  ;;  %v269_v31 = vmul.f32 0.015625, %v733_v53  ;;  %vm310_vm6 = vcmp.eq.f32.partialorder %v856_v0, inf }
 0x132   : > { %v726_v57 = vpop.f32.mrb[6].mxu0  ;;  %v259_v60 = vmul.f32 0.015625, %v208_v54  ;;  %v854_v61 = vpop.f32.mrb[6].mxu1  ;;  %770 = vrsqrt.f32 %v856_v0  ;;  %v267_v26 = vmul.f32 0.015625, %v240_v56  ;;  %vm312_vm7 = vcmp.eq.f32.partialorder %v856_v0, 0.0 }
 0x133   : > { %v211_v62 = vpop.f32.mrb[7].mxu0  ;;  %v243_v63 = vpop.f32.mrb[7].mxu1  ;;  %v262_v3 = vmul.f32 0.015625, %v726_v57  ;;  %v863_v6 = vadd.f32 1e-05, %v261_v1  ;;  %v313_v39 = vand.u32 2147483648, %v856_v0 }
 0x134   : > { %v859_v2 = vadd.f32 1e-05, %v259_v60  ;;  %v260_v4 = vmul.f32 0.015625, %v211_v62  ;;  %v268_v32 = vmul.f32 0.015625, %v243_v63  ;;  %v903_v37 = vadd.f32 1e-05, %v267_v26 }
 0x135   : > { %v865_v11 = vadd.f32 1e-05, %v262_v3  ;;  %v270_v41 = vmul.f32 0.015625, %v854_v61  ;;  %vm345_vm8 = vcmp.eq.f32.partialorder %v869_v13, inf  ;;  %v915_v44 = vadd.f32 1e-05, %v269_v31 }
 0x136   : > { %772 = vrsqrt.f32 %v859_v2  ;;  %v867_v12 = vadd.f32 1e-05, %v260_v4  ;;  %vm317_vm9 = vcmp.eq.f32.partialorder %v859_v2, inf  ;;  %v918_v45 = vadd.f32 1e-05, %v268_v32 }
 0x137   : > { %774 = vrsqrt.f32 %v863_v6  ;;  %vm319_vm10 = vcmp.eq.f32.partialorder %v859_v2, 0.0  ;;  %v320_v51 = vand.u32 2147483648, %v859_v2  ;;  %v930_v55 = vadd.f32 1e-05, %v270_v41 }
 0x138   : > { %v765_v8 = vpop.eup %764  ;;  %776 = vrsqrt.f32 %v867_v12  ;;  %vm324_vm11 = vcmp.eq.f32.partialorder %v867_v12, inf  ;;  %v327_v60 = vand.u32 2147483648, %v867_v12  ;;  %vm347_vm12 = vcmp.eq.f32.partialorder %v869_v13, 0.0 }
 0x139   : > { %v288_v17 = vmul.f32 %v765_v8, %v849_v50  ;;  %778 = vrsqrt.f32 %v865_v11  ;;  %vm326_vm13 = vcmp.eq.f32.partialorder %v867_v12, 0.0  ;;  %vm331_vm14 = vcmp.eq.f32.partialorder %v863_v6, inf }
 0x13a   : > { %v767_v9 = vpop.eup %766  ;;  %780 = vrsqrt.f32 %v869_v13  ;;  %vm333_vm15 = vcmp.eq.f32.partialorder %v863_v6, 0.0  ;;  %v334_v7 = vand.u32 2147483648, %v863_v6  ;;  %v362_v32 = vand.u32 2147483648, %v872_v16 }
 0x13b   : > { %v295_v14 = vmul.f32 %v767_v9, %v272_v59  ;;  %v769_v15 = vpop.eup %768  ;;  %782 = vrsqrt.f32 %v872_v16  ;;  %v290_v27 = vsel %vm289_vm3, %v849_v50, %v288_v17  ;;  %v341_v17 = vand.u32 2147483648, %v865_v11 }
 0x13c   : > { %v771_v20 = vpop.eup %770  ;;  %v302_v21 = vmul.f32 %v769_v15, %v851_v58  ;;  %784 = vrsqrt.f32 %v878_v19  ;;  %v899_v36 = vsel %vm291_vm5, %v292_v28, %v290_v27  ;;  %v348_v15 = vand.u32 2147483648, %v869_v13 }
 0x13d   : > { %v297_v23 = vsel %vm296_vm2, %v272_v59, %v295_v14  ;;  %v309_v34 = vmul.f32 %v771_v20, %v856_v0  ;;  %786 = vrsqrt.f32 %v888_v29  ;;  %v399_v46 = vmul.f32 %v899_v36, %v899_v36 }
 0x13e   : > { %v890_v30 = vsel %vm298_vm4, %v299_v25, %v297_v23  ;;  %v304_v33 = vsel %vm303_vm0, %v851_v58, %v302_v21  ;;  %788 = vrsqrt.f32 %v903_v37  ;;  %vm338_vm0 = vcmp.eq.f32.partialorder %v865_v11, inf }
 0x13f   : > { %v400_v40 = vmul.f32 %v890_v30, %v890_v30  ;;  %v912_v43 = vsel %vm305_vm1, %v306_v22, %v304_v33  ;;  %v311_v47 = vsel %vm310_vm6, %v856_v0, %v309_v34  ;;  %790 = vrsqrt.f32 %v918_v45 }
 0x140   : > { %v773_v24 = vpop.eup %772  ;;  %v935_v58 = vsel %vm312_vm7, %v313_v39, %v311_v47  ;;  %v401_v61 = vmul.f32 %v912_v43, %v912_v43  ;;  %792 = vrsqrt.f32 %v915_v44  ;;  %vm352_vm1 = vcmp.eq.f32.partialorder %v878_v19, inf }
 0x141   : > { %v316_v35 = vmul.f32 %v773_v24, %v859_v2  ;;  %v775_v38 = vpop.eup %774  ;;  %v415_v53 = vadd.f32 %v400_v40, %v399_v46  ;;  %794 = vrsqrt.f32 %v930_v55  ;;  %vm340_vm2 = vcmp.eq.f32.partialorder %v865_v11, 0.0 }
 0x142   : > { %v777_v42 = vpop.eup %776  ;;  %v330_v54 = vmul.f32 %v775_v38, %v863_v6  ;;  %v355_v23 = vand.u32 2147483648, %v878_v19  ;;  %vm354_vm3 = vcmp.eq.f32.partialorder %v878_v19, 0.0  ;;  %vm359_vm4 = vcmp.eq.f32.partialorder %v872_v16, inf }
 0x143   : > { %v318_v48 = vsel %vm317_vm9, %v859_v2, %v316_v35  ;;  %v323_v49 = vmul.f32 %v777_v42, %v867_v12  ;;  %v779_v50 = vpop.eup %778  ;;  %v402_v2 = vmul.f32 %v935_v58, %v935_v58  ;;  %v416_v5 = vadd.f32 %v415_v53, %v401_v61 }
 0x144   : > { %v781_v52 = vpop.eup %780  ;;  %v937_v59 = vsel %vm319_vm10, %v320_v51, %v318_v48  ;;  %v337_v62 = vmul.f32 %v779_v50, %v865_v11  ;;  %v332_v3 = vsel %vm331_vm14, %v863_v6, %v330_v54  ;;  %vm361_vm5 = vcmp.eq.f32.partialorder %v872_v16, 0.0 }
 0x145   : > { %v325_v56 = vsel %vm324_vm11, %v867_v12, %v323_v49  ;;  %v783_v57 = vpop.eup %782  ;;  %v344_v0 = vmul.f32 %v781_v52, %v869_v13  ;;  %v403_v4 = vmul.f32 %v937_v59, %v937_v59  ;;  %v417_v14 = vadd.f32 %v416_v5, %v402_v2 }
 0x146   : > { %v785_v63 = vpop.eup %784  ;;  %v949_v1 = vsel %vm326_vm13, %v327_v60, %v325_v56  ;;  %v339_v10 = vsel %vm338_vm0, %v865_v11, %v337_v62  ;;  %v967_v6 = vsel %vm333_vm15, %v334_v7, %v332_v3  ;;  %v358_v18 = vmul.f32 %v783_v57, %v872_v16 }
 0x147   : > { %v787_v8 = vpop.eup %786  ;;  %v351_v9 = vmul.f32 %v785_v63, %v878_v19  ;;  %v404_v12 = vmul.f32 %v949_v1, %v949_v1  ;;  %v346_v20 = vsel %vm345_vm8, %v869_v13, %v344_v0  ;;  %v418_v21 = vadd.f32 %v417_v14, %v403_v4 }
 0x148   : > { %v789_v22 = vpop.eup %788  ;;  %v975_v24 = vsel %vm340_vm2, %v341_v17, %v339_v10  ;;  %v365_v26 = vmul.f32 %v787_v8, %v888_v29  ;;  %v405_v27 = vmul.f32 %v967_v6, %v967_v6  ;;  %v985_v11 = vsel %vm347_vm12, %v348_v15, %v346_v20 }
 0x149   : > { %v353_v25 = vsel %vm352_vm1, %v878_v19, %v351_v9  ;;  %v419_v28 = vadd.f32 %v418_v21, %v404_v12  ;;  %v791_v31 = vpop.eup %790  ;;  %vm366_vm6 = vcmp.eq.f32.partialorder %v888_v29, inf  ;;  %v360_v33 = vsel %vm359_vm4, %v872_v16, %v358_v18 }
 0x14a   : > { %v372_v34 = vmul.f32 %v789_v22, %v903_v37  ;;  %v406_v35 = vmul.f32 %v975_v24, %v975_v24  ;;  %v793_v39 = vpop.eup %792  ;;  %v996_v13 = vsel %vm354_vm3, %v355_v23, %v353_v25  ;;  %vm368_vm7 = vcmp.eq.f32.partialorder %v888_v29, 0.0 }
 0x14b   : > { %v420_v38 = vadd.f32 %v419_v28, %v405_v27  ;;  %v369_v40 = vand.u32 2147483648, %v888_v29  ;;  %vm373_vm8 = vcmp.eq.f32.partialorder %v903_v37, inf  ;;  %v367_v41 = vsel %vm366_vm6, %v888_v29, %v365_v26  ;;  %v795_v48 = vpop.eup %794 }
 0x14c   : > { %v379_v42 = vmul.f32 %v791_v31, %v918_v45  ;;  %v407_v46 = vmul.f32 %v985_v11, %v985_v11  ;;  %v1007_v19 = vsel %vm361_vm5, %v362_v32, %v360_v33  ;;  %vm375_vm9 = vcmp.eq.f32.partialorder %v903_v37, 0.0 }
 0x14d   : > { %v421_v47 = vadd.f32 %v420_v38, %v406_v35  ;;  %v376_v49 = vand.u32 2147483648, %v903_v37  ;;  %vm380_vm10 = vcmp.eq.f32.partialorder %v918_v45, inf  ;;  %v374_v50 = vsel %vm373_vm8, %v903_v37, %v372_v34 }
 0x14e   : > { %v386_v51 = vmul.f32 %v793_v39, %v915_v44  ;;  %v408_v52 = vmul.f32 %v996_v13, %v996_v13  ;;  %v370_v54 = vsel %vm368_vm7, %v369_v40, %v367_v41  ;;  %vm382_vm11 = vcmp.eq.f32.partialorder %v918_v45, 0.0 }
 0x14f   : > { %v422_v53 = vadd.f32 %v421_v47, %v407_v46  ;;  %v383_v16 = vand.u32 2147483648, %v918_v45  ;;  %vm387_vm12 = vcmp.eq.f32.partialorder %v915_v44, inf  ;;  %v381_v56 = vsel %vm380_vm10, %v918_v45, %v379_v42 }
 0x150   : > { %v393_v57 = vmul.f32 %v795_v48, %v930_v55  ;;  %v409_v37 = vmul.f32 %v1007_v19, %v1007_v19  ;;  %v377_v61 = vsel %vm375_vm9, %v376_v49, %v374_v50  ;;  %v390_v62 = vand.u32 2147483648, %v915_v44 }
 0x151   : > { %v423_v60 = vadd.f32 %v422_v53, %v408_v52  ;;  %vm394_vm13 = vcmp.eq.f32.partialorder %v930_v55, inf  ;;  %v388_v29 = vsel %vm387_vm12, %v915_v44, %v386_v51  ;;  %vm389_vm14 = vcmp.eq.f32.partialorder %v915_v44, 0.0 }
 0x152   : > { %v410_v63 = vmul.f32 %v370_v54, %v370_v54  ;;  %v384_v2 = vsel %vm382_vm11, %v383_v16, %v381_v56  ;;  %v397_v45 = vand.u32 2147483648, %v930_v55  ;;  %v395_v3 = vsel %vm394_vm13, %v930_v55, %v393_v57 }
 0x153   : > { %v424_v0 = vadd.f32 %v423_v60, %v409_v37  ;;  %vm396_vm15 = vcmp.eq.f32.partialorder %v930_v55, 0.0  ;;  %v411_v4 = vmul.f32 %v377_v61, %v377_v61  ;;  %v391_v7 = vsel %vm389_vm14, %v390_v62, %v388_v29 }
 0x154   : > { %v412_v8 = vmul.f32 %v384_v2, %v384_v2  ;;  %v398_v10 = vsel %vm396_vm15, %v397_v45, %v395_v3  ;;  %v413_v12 = vmul.f32 %v391_v7, %v391_v7 }
 0x155   : > { %v425_v5 = vadd.f32 %v424_v0, %v410_v63  ;;  %v414_v15 = vmul.f32 %v398_v10, %v398_v10 }
 0x157   : > { %v426_v9 = vadd.f32 %v425_v5, %v411_v4 }
 0x159   : > { %v427_v14 = vadd.f32 %v426_v9, %v412_v8 }
 0x15b   : > { %v428_v17 = vadd.f32 %v427_v14, %v413_v12 }
 0x15d   : > { %v429_v44 = vadd.f32 %v428_v17, %v414_v15 }
 0x15f   : > { %430 = vadd.xlane.f32.xlu0 %v429_v44 }
 0x1ec   : > { %v431_v18 = vpop.xlane.xlu0 %430 }
 0x1ed   : > { %v432_v20 = vrot.slane %v431_v18, 4 }
 0x1ef   : > { %v433_v21 = vadd.f32 %v432_v20, %v431_v18 }
 0x1f1   : > { %v434_v22 = vrot.slane %v433_v21, 2 }
 0x1f3   : > { %v435_v23 = vadd.f32 %v434_v22, %v433_v21 }
 0x1f5   : > { %v436_v25 = vrot.slane %v435_v23, 1 }
 0x1f7   : > { %v437_v55 = vadd.f32 %v436_v25, %v435_v23 }
 0x1f9   : > { %751 = vpush %v437_v55 }
 0x22a   : > { %s752_s12 = spop %751 }
 0x22b   : > { %s439_s14 = smax.f32 %s806_s13, %s752_s12 }
 0x22c   : > { %v440_v26 = vstv %s439_s14 }
 0x22d   : > { %796 = vrsqrt.f32 %v440_v26 }
 0x237   : > { %v797_v27 = vpop.eup %796 }
 0x238   : > { %753 = vpush %v797_v27 }
 0x269   : > { %s754_s15 = spop %753 }
 0x26a   : > { %v443_v28 = vstv %s754_s15 }
 0x26b   : > { %v444_v31 = vmul.f32 %v443_v28, %v899_v36  ;;  %v445_v32 = vmul.f32 %v443_v28, %v890_v30  ;;  %v446_v33 = vmul.f32 %v443_v28, %v912_v43  ;;  %v447_v34 = vmul.f32 %v443_v28, %v935_v58 }
 0x26c   : > { %v448_v35 = vmul.f32 %v443_v28, %v937_v59  ;;  %v449_v38 = vmul.f32 %v443_v28, %v949_v1  ;;  %v450_v39 = vmul.f32 %v443_v28, %v967_v6  ;;  %v451_v40 = vmul.f32 %v443_v28, %v975_v24 }
 0x26d   : > { %v452_v41 = vmul.f32 %v443_v28, %v985_v11  ;;  %v453_v42 = vmul.f32 %v443_v28, %v996_v13  ;;  %v454_v36 = vmul.f32 %v443_v28, %v1007_v19  ;;  %v455_v46 = vmul.f32 %v443_v28, %v370_v54 }
 0x26e   : > { %v456_v30 = vmul.f32 %v443_v28, %v377_v61  ;;  %v457_v43 = vmul.f32 %v443_v28, %v384_v2  ;;  %v458_v58 = vmul.f32 %v443_v28, %v391_v7  ;;  %v459_v59 = vmul.f32 %v443_v28, %v398_v10 }
 0x26f   : > { %v643_v1 = vpack.c.bf16 %v445_v32, %v444_v31  ;;  %v648_v47 = vpack.c.bf16 %v447_v34, %v446_v33  ;;  %v653_v6 = vpack.c.bf16 %v449_v38, %v448_v35  ;;  %v658_v48 = vpack.c.bf16 %v451_v40, %v450_v39 }
 0x270   : > { %v663_v24 = vpack.c.bf16 %v453_v42, %v452_v41  ;;  %v668_v49 = vpack.c.bf16 %v455_v46, %v454_v36  ;;  %v673_v11 = vpack.c.bf16 %v457_v43, %v456_v30  ;;  %v678_v50 = vpack.c.bf16 %v459_v59, %v458_v58 }
 0x271   : > { %644 = vst [vmem:[%s116_s19] sm:$0xff] %v643_v1   ;;  %680 = vst [vmem:[%s116_s19 + $0x8] sm:$0xff] %v648_v47  }
 0x272   : > { %681 = vst [vmem:[%s116_s19 + $0x10] sm:$0xff] %v653_v6   ;;  %682 = vst [vmem:[%s116_s19 + $0x18] sm:$0xff] %v658_v48  }
 0x273   : > { %683 = vst [vmem:[%s116_s19 + $0x20] sm:$0xff] %v663_v24   ;;  %684 = vst [vmem:[%s116_s19 + $0x28] sm:$0xff] %v668_v49  }
 0x274   : > { %685 = vst [vmem:[%s116_s19 + $0x30] sm:$0xff] %v673_v11   ;;  %686 = vst [vmem:[%s116_s19 + $0x38] sm:$0xff] %v678_v50  }
 0x275 PF: > { %s11_s6 = sadd.s32 1, %s804_s6  }
 0x276   : > { %p8_p4 = scmp.ge.s32.totalorder %s11_s6, 4  }
 0x278   :  { %10 = sbr.rel (!%p8_p4) target bundleno = 1 (0x1), region = 54 }

// kernel: bcnn_forward.3
= control target key start
LH: loop header
LB: loop body
LE: loop exit
PB: predicated region body
PF: predicated region fallthrough
CT: control target
= control target key end

     0   :  { %s2740_s9 = smov 0   ;;  %s2742_s10 = smov 0   ;;  %s3140_s0 = inlined_call_operand.vmem [shape: bf16[2,16384], index: 0, kind: input, shape index: {}]   ;;  %s3141_s1 = inlined_call_operand.vmem [shape: bf16[16,16384], index: 1, kind: input, shape index: {}]   ;;  %s3142_s2 = inlined_call_operand.vmem [shape: f32[2,2,16], index: 2, kind: output, shape index: {}]  }
   0x1   :  { %s2744_s11 = smov 0   ;;  %s2746_s12 = smov 0  }
   0x2   :  { %s2748_s13 = smov 0  }
   0x3 LB: > { %s24_s14 = sadd.s32 1, %s2717_s12  ;;  %p68_p1 = scmp.ne.s32.totalorder %s2709_s10, %s2705_s9  ;;  %s2721_s13 = sphi %s2748_s13, %s12_s13   ;;  %s2717_s12 = sphi %s2746_s12, %s3146_s12   ;;  %s2713_s11 = sphi %s2744_s11, %s3145_s11   ;;  %s2709_s10 = sphi %s2742_s10, %s3144_s10   ;;  %s2705_s9 = sphi %s2740_s9, %s3143_s9  }
   0x4   : > { %p26_p0 = scmp.ge.s32.totalorder %s24_s14, 2  ;;  %p69_p2 = scmp.eq.s32.totalorder %s2721_s13, 0 }
   0x5   : > { %s61_s16 = sadd.s32 1, %s2709_s10  ;;  %p2558_p5 = scmp.ge.s32.totalorder %s2721_s13, 2 }
   0x6   : > { %s3148_s14 = smov (%p26_p0, %s24_s14), 0  ;;  %p70_p3 = por %p69_p2, %p68_p1 }
   0x7   : > { %s58_s15 = ssub.s32 %s2717_s12, %s3148_s14  ;;  %120 = sbr.rel (%p2558_p5) target bundleno = 50 (0x32), region = 16 }
   0x8   : > { %p59_p4 = scmp.eq.s32.totalorder %s58_s15, 0 }
   0xa   : > { %s2775_s17 = scalar_select %p59_p4, %s2709_s10, %s61_s16  }
   0xe   : > { %133 = sbr.rel (!%p70_p3) target bundleno = 50 (0x32), region = 24  ;;  %s135_s18 = sand.u32 (%p70_p3), 1, %s2709_s10  }
   0xf   : > { %s2632_s19 = sshll.u32 (%p70_p3), %s2717_s12, 8  ;;  %s2559_s20 = sshll.u32 (%p70_p3), %s135_s18, 9 }
  0x10   : > { %s2783_s23 = scalar_lea.vmem (%p70_p3), %s3141_s1, %s2632_s19  ;;  %s2788_s24 = scalar_lea.vmem (%p70_p3), [#allocation2], %s2559_s20 }
  0x11   : > { %v154_v0 = vld [vmem:[%s2783_s23] sm:$0xff] (%p70_p3)  ;;  %v156_v1 = vld [vmem:[%s2783_s23 + $0x8] sm:$0xff] (%p70_p3)  ;;  %v158_v2 = vld [vmem:[%s2783_s23 + $0x10] sm:$0xff] (%p70_p3) }
  0x12   : > { %155 = vst [vmem:[%s2788_s24] sm:$0xff] (%p70_p3), %v154_v0  ;;  %157 = vst [vmem:[%s2788_s24 + $0x8] sm:$0xff] (%p70_p3), %v156_v1  ;;  %v160_v3 = vld [vmem:[%s2783_s23 + $0x18] sm:$0xff] (%p70_p3)  ;;  %v162_v4 = vld [vmem:[%s2783_s23 + $0x20] sm:$0xff] (%p70_p3) }
  0x13   : > { %159 = vst [vmem:[%s2788_s24 + $0x10] sm:$0xff] (%p70_p3), %v158_v2  ;;  %v164_v5 = vld [vmem:[%s2783_s23 + $0x28] sm:$0xff] (%p70_p3)  ;;  %161 = vst [vmem:[%s2788_s24 + $0x18] sm:$0xff] (%p70_p3), %v160_v3  ;;  %v166_v6 = vld [vmem:[%s2783_s23 + $0x30] sm:$0xff] (%p70_p3) }
  0x14   : > { %163 = vst [vmem:[%s2788_s24 + $0x20] sm:$0xff] (%p70_p3), %v162_v4  ;;  %165 = vst [vmem:[%s2788_s24 + $0x28] sm:$0xff] (%p70_p3), %v164_v5  ;;  %v168_v7 = vld [vmem:[%s2783_s23 + $0x38] sm:$0xff] (%p70_p3)  ;;  %v170_v8 = vld [vmem:[%s2783_s23 + $0x40] sm:$0xff] (%p70_p3) }
  0x15   : > { %167 = vst [vmem:[%s2788_s24 + $0x30] sm:$0xff] %v166_v6  ;;  %169 = vst [vmem:[%s2788_s24 + $0x38] sm:$0xff] %v168_v7  ;;  %v172_v9 = vld [vmem:[%s2783_s23 + $0x48] sm:$0xff]  ;;  %v174_v10 = vld [vmem:[%s2783_s23 + $0x50] sm:$0xff] }
  0x16   : > { %171 = vst [vmem:[%s2788_s24 + $0x40] sm:$0xff] %v170_v8  ;;  %v176_v11 = vld [vmem:[%s2783_s23 + $0x58] sm:$0xff]  ;;  %173 = vst [vmem:[%s2788_s24 + $0x48] sm:$0xff] %v172_v9  ;;  %v178_v12 = vld [vmem:[%s2783_s23 + $0x60] sm:$0xff] }
  0x17   : > { %175 = vst [vmem:[%s2788_s24 + $0x50] sm:$0xff] %v174_v10  ;;  %177 = vst [vmem:[%s2788_s24 + $0x58] sm:$0xff] %v176_v11  ;;  %v180_v13 = vld [vmem:[%s2783_s23 + $0x68] sm:$0xff]  ;;  %v182_v14 = vld [vmem:[%s2783_s23 + $0x70] sm:$0xff] }
  0x18   : > { %179 = vst [vmem:[%s2788_s24 + $0x60] sm:$0xff] %v178_v12  ;;  %181 = vst [vmem:[%s2788_s24 + $0x68] sm:$0xff] %v180_v13  ;;  %v184_v15 = vld [vmem:[%s2783_s23 + $0x78] sm:$0xff]  ;;  %v186_v16 = vld [vmem:[%s2783_s23 + $0x80] sm:$0xff] }
  0x19   : > { %183 = vst [vmem:[%s2788_s24 + $0x70] sm:$0xff] %v182_v14  ;;  %v188_v17 = vld [vmem:[%s2783_s23 + $0x88] sm:$0xff]  ;;  %185 = vst [vmem:[%s2788_s24 + $0x78] sm:$0xff] %v184_v15  ;;  %v190_v18 = vld [vmem:[%s2783_s23 + $0x90] sm:$0xff] }
  0x1a   : > { %187 = vst [vmem:[%s2788_s24 + $0x80] sm:$0xff] %v186_v16  ;;  %189 = vst [vmem:[%s2788_s24 + $0x88] sm:$0xff] %v188_v17  ;;  %v192_v19 = vld [vmem:[%s2783_s23 + $0x98] sm:$0xff]  ;;  %v194_v20 = vld [vmem:[%s2783_s23 + $0xa0] sm:$0xff] }
  0x1b   : > { %191 = vst [vmem:[%s2788_s24 + $0x90] sm:$0xff] %v190_v18  ;;  %193 = vst [vmem:[%s2788_s24 + $0x98] sm:$0xff] %v192_v19  ;;  %v196_v21 = vld [vmem:[%s2783_s23 + $0xa8] sm:$0xff]  ;;  %v198_v22 = vld [vmem:[%s2783_s23 + $0xb0] sm:$0xff] }
  0x1c   : > { %195 = vst [vmem:[%s2788_s24 + $0xa0] sm:$0xff] %v194_v20  ;;  %v200_v23 = vld [vmem:[%s2783_s23 + $0xb8] sm:$0xff]  ;;  %197 = vst [vmem:[%s2788_s24 + $0xa8] sm:$0xff] %v196_v21  ;;  %v202_v24 = vld [vmem:[%s2783_s23 + $0xc0] sm:$0xff] }
  0x1d   : > { %199 = vst [vmem:[%s2788_s24 + $0xb0] sm:$0xff] %v198_v22  ;;  %201 = vst [vmem:[%s2788_s24 + $0xb8] sm:$0xff] %v200_v23  ;;  %v204_v25 = vld [vmem:[%s2783_s23 + $0xc8] sm:$0xff]  ;;  %v206_v26 = vld [vmem:[%s2783_s23 + $0xd0] sm:$0xff] }
  0x1e   : > { %203 = vst [vmem:[%s2788_s24 + $0xc0] sm:$0xff] %v202_v24  ;;  %205 = vst [vmem:[%s2788_s24 + $0xc8] sm:$0xff] %v204_v25  ;;  %v208_v27 = vld [vmem:[%s2783_s23 + $0xd8] sm:$0xff]  ;;  %v210_v28 = vld [vmem:[%s2783_s23 + $0xe0] sm:$0xff] }
  0x1f   : > { %207 = vst [vmem:[%s2788_s24 + $0xd0] sm:$0xff] %v206_v26  ;;  %v212_v29 = vld [vmem:[%s2783_s23 + $0xe8] sm:$0xff]  ;;  %209 = vst [vmem:[%s2788_s24 + $0xd8] sm:$0xff] %v208_v27  ;;  %v214_v30 = vld [vmem:[%s2783_s23 + $0xf0] sm:$0xff] }
  0x20   : > { %211 = vst [vmem:[%s2788_s24 + $0xe0] sm:$0xff] %v210_v28  ;;  %213 = vst [vmem:[%s2788_s24 + $0xe8] sm:$0xff] %v212_v29  ;;  %v216_v31 = vld [vmem:[%s2783_s23 + $0xf8] sm:$0xff]  ;;  %v218_v32 = vld [vmem:[%s2783_s23 + $0x200] sm:$0xff] }
  0x21   : > { %215 = vst [vmem:[%s2788_s24 + $0xf0] sm:$0xff] %v214_v30  ;;  %217 = vst [vmem:[%s2788_s24 + $0xf8] sm:$0xff] %v216_v31  ;;  %v220_v33 = vld [vmem:[%s2783_s23 + $0x208] sm:$0xff]  ;;  %v222_v34 = vld [vmem:[%s2783_s23 + $0x210] sm:$0xff] }
  0x22   : > { %219 = vst [vmem:[%s2788_s24 + $0x100] sm:$0xff] %v218_v32  ;;  %v224_v35 = vld [vmem:[%s2783_s23 + $0x218] sm:$0xff]  ;;  %221 = vst [vmem:[%s2788_s24 + $0x108] sm:$0xff] %v220_v33  ;;  %v226_v36 = vld [vmem:[%s2783_s23 + $0x220] sm:$0xff] }
  0x23   : > { %223 = vst [vmem:[%s2788_s24 + $0x110] sm:$0xff] %v222_v34  ;;  %225 = vst [vmem:[%s2788_s24 + $0x118] sm:$0xff] %v224_v35  ;;  %v228_v37 = vld [vmem:[%s2783_s23 + $0x228] sm:$0xff]  ;;  %v230_v38 = vld [vmem:[%s2783_s23 + $0x230] sm:$0xff] }
  0x24   : > { %227 = vst [vmem:[%s2788_s24 + $0x120] sm:$0xff] %v226_v36  ;;  %229 = vst [vmem:[%s2788_s24 + $0x128] sm:$0xff] %v228_v37  ;;  %v232_v39 = vld [vmem:[%s2783_s23 + $0x238] sm:$0xff]  ;;  %v234_v40 = vld [vmem:[%s2783_s23 + $0x240] sm:$0xff] }
  0x25   : > { %231 = vst [vmem:[%s2788_s24 + $0x130] sm:$0xff] %v230_v38  ;;  %v236_v41 = vld [vmem:[%s2783_s23 + $0x248] sm:$0xff]  ;;  %233 = vst [vmem:[%s2788_s24 + $0x138] sm:$0xff] %v232_v39  ;;  %v238_v42 = vld [vmem:[%s2783_s23 + $0x250] sm:$0xff] }
  0x26   : > { %235 = vst [vmem:[%s2788_s24 + $0x140] sm:$0xff] %v234_v40  ;;  %237 = vst [vmem:[%s2788_s24 + $0x148] sm:$0xff] %v236_v41  ;;  %v240_v43 = vld [vmem:[%s2783_s23 + $0x258] sm:$0xff]  ;;  %v242_v44 = vld [vmem:[%s2783_s23 + $0x260] sm:$0xff] }
  0x27   : > { %239 = vst [vmem:[%s2788_s24 + $0x150] sm:$0xff] %v238_v42  ;;  %241 = vst [vmem:[%s2788_s24 + $0x158] sm:$0xff] %v240_v43  ;;  %v244_v45 = vld [vmem:[%s2783_s23 + $0x268] sm:$0xff]  ;;  %v246_v46 = vld [vmem:[%s2783_s23 + $0x270] sm:$0xff] }
  0x28   : > { %243 = vst [vmem:[%s2788_s24 + $0x160] sm:$0xff] %v242_v44  ;;  %v248_v47 = vld [vmem:[%s2783_s23 + $0x278] sm:$0xff]  ;;  %245 = vst [vmem:[%s2788_s24 + $0x168] sm:$0xff] %v244_v45  ;;  %v250_v48 = vld [vmem:[%s2783_s23 + $0x280] sm:$0xff] }
  0x29   : > { %247 = vst [vmem:[%s2788_s24 + $0x170] sm:$0xff] %v246_v46  ;;  %249 = vst [vmem:[%s2788_s24 + $0x178] sm:$0xff] %v248_v47  ;;  %v252_v49 = vld [vmem:[%s2783_s23 + $0x288] sm:$0xff]  ;;  %v254_v50 = vld [vmem:[%s2783_s23 + $0x290] sm:$0xff] }
  0x2a   : > { %251 = vst [vmem:[%s2788_s24 + $0x180] sm:$0xff] %v250_v48  ;;  %253 = vst [vmem:[%s2788_s24 + $0x188] sm:$0xff] %v252_v49  ;;  %v256_v51 = vld [vmem:[%s2783_s23 + $0x298] sm:$0xff]  ;;  %v258_v52 = vld [vmem:[%s2783_s23 + $0x2a0] sm:$0xff] }
  0x2b   : > { %255 = vst [vmem:[%s2788_s24 + $0x190] sm:$0xff] %v254_v50  ;;  %v260_v53 = vld [vmem:[%s2783_s23 + $0x2a8] sm:$0xff]  ;;  %257 = vst [vmem:[%s2788_s24 + $0x198] sm:$0xff] %v256_v51  ;;  %v262_v54 = vld [vmem:[%s2783_s23 + $0x2b0] sm:$0xff] }
  0x2c   : > { %259 = vst [vmem:[%s2788_s24 + $0x1a0] sm:$0xff] %v258_v52  ;;  %261 = vst [vmem:[%s2788_s24 + $0x1a8] sm:$0xff] %v260_v53  ;;  %v264_v55 = vld [vmem:[%s2783_s23 + $0x2b8] sm:$0xff]  ;;  %v266_v56 = vld [vmem:[%s2783_s23 + $0x2c0] sm:$0xff] }
  0x2d   : > { %263 = vst [vmem:[%s2788_s24 + $0x1b0] sm:$0xff] %v262_v54  ;;  %265 = vst [vmem:[%s2788_s24 + $0x1b8] sm:$0xff] %v264_v55  ;;  %v268_v57 = vld [vmem:[%s2783_s23 + $0x2c8] sm:$0xff]  ;;  %v270_v58 = vld [vmem:[%s2783_s23 + $0x2d0] sm:$0xff] }
  0x2e   : > { %267 = vst [vmem:[%s2788_s24 + $0x1c0] sm:$0xff] %v266_v56  ;;  %v272_v59 = vld [vmem:[%s2783_s23 + $0x2d8] sm:$0xff]  ;;  %269 = vst [vmem:[%s2788_s24 + $0x1c8] sm:$0xff] %v268_v57  ;;  %v274_v60 = vld [vmem:[%s2783_s23 + $0x2e0] sm:$0xff] }
  0x2f   : > { %271 = vst [vmem:[%s2788_s24 + $0x1d0] sm:$0xff] %v270_v58  ;;  %273 = vst [vmem:[%s2788_s24 + $0x1d8] sm:$0xff] %v272_v59  ;;  %v276_v61 = vld [vmem:[%s2783_s23 + $0x2e8] sm:$0xff]  ;;  %v278_v62 = vld [vmem:[%s2783_s23 + $0x2f0] sm:$0xff] }
  0x30   : > { %275 = vst [vmem:[%s2788_s24 + $0x1e0] sm:$0xff] %v274_v60  ;;  %277 = vst [vmem:[%s2788_s24 + $0x1e8] sm:$0xff] %v276_v61  ;;  %v280_v63 = vld [vmem:[%s2783_s23 + $0x2f8] sm:$0xff] }
  0x31   : > { %279 = vst [vmem:[%s2788_s24 + $0x1f0] sm:$0xff] %v278_v62  ;;  %281 = vst [vmem:[%s2788_s24 + $0x1f8] sm:$0xff] %v280_v63 }
  0x32 PF: > { %p2562_p6 = scmp.ge.s32.totalorder %s2721_s13, 1  ;;  %p286_p7 = scmp.lt.s32.totalorder %s2721_s13, 3 }
  0x34   : > { %p287_p8 = pnand %p2562_p6, %p286_p7 }
  0x35   : > { %s293_s25 = sand.u32 (!%p287_p8), 1, %s2705_s9   ;;  %s2564_s26 = sshll.u32 (!%p287_p8), %s2713_s11, 6  ;;  %v423_v0 = vlaneseq (!%p287_p8)  ;;  %v2723_v1 = vmov (!%p287_p8), 1966171168   ;;  %vm336_vm0 = vcmask (!%p287_p8), 123904  }
  0x36   : > { %290 = sbr.rel (%p287_p8) target bundleno = 410 (0x19a), region = 47  ;;  %s2563_s27 = sshll.u32 (!%p287_p8), %s293_s25, 9  ;;  %v421_v2 = vunpack.c.l.s4 (!%p287_p8), %v2723_v1 }
  0x37   : > { %p320_p9 = scmp.lt.s32.totalorder (!%p287_p8), %s2564_s26, 127  ;;  %v424_v3 = vshrl.u32 (!%p287_p8), %v423_v0, 7  ;;  %s2919_s28 = scalar_lea.vmem (!%p287_p8), [#allocation2], %s2563_s27 }
  0x38   : > { %v347_v4 = vld [vmem:[%s2919_s28] sm:$0xff] (!%p287_p8)  ;;  %v348_v6 = vld [vmem:[%s2919_s28 + $0x8] sm:$0xff] (!%p287_p8)  ;;  %v422_v7 = vunpack.c.0.s8 (!%p287_p8), %v421_v2  ;;  %v349_v11 = vld [vmem:[%s2919_s28 + $0x10] sm:$0xff] (!%p287_p8)  ;;  %p327_p10 = scmp.lt.s32.totalorder (!%p287_p8), %s2713_s11, 1 }
  0x39   : > { %v379_v5 = vld [vmem:[%s2919_s28 + $0x100] sm:$0xff] (!%p287_p8)  ;;  %v380_v10 = vld [vmem:[%s2919_s28 + $0x108] sm:$0xff] (!%p287_p8)  ;;  %v381_v12 = vld [vmem:[%s2919_s28 + $0x110] sm:$0xff] (!%p287_p8) }
  0x3a   : > { %v2567_v8 = vcombine.high (!%p287_p8), %v347_v4, %v379_v5  ;;  %v2566_v9 = vcombine.low (!%p287_p8), %v347_v4, %v379_v5  ;;  %v2569_v13 = vcombine.high (!%p287_p8), %v348_v6, %v380_v10  ;;  %v2568_v14 = vcombine.low (!%p287_p8), %v348_v6, %v380_v10  ;;  %v350_v16 = vld [vmem:[%s2919_s28 + $0x18] sm:$0xff] (!%p287_p8)  ;;  %v351_v27 = vld [vmem:[%s2919_s28 + $0x20] sm:$0xff] (!%p287_p8)  ;;  %v352_v33 = vld [vmem:[%s2919_s28 + $0x28] sm:$0xff] (!%p287_p8) }
  0x3b   : > { %v2932_v15 = vsub.s32 (!%p287_p8), %v422_v7, %v424_v3  ;;  %v382_v17 = vld [vmem:[%s2919_s28 + $0x118] sm:$0xff] (!%p287_p8)  ;;  %v2571_v19 = vcombine.high (!%p287_p8), %v349_v11, %v381_v12  ;;  %v383_v28 = vld [vmem:[%s2919_s28 + $0x120] sm:$0xff] (!%p287_p8)  ;;  %v2570_v31 = vcombine.low (!%p287_p8), %v349_v11, %v381_v12  ;;  %v384_v34 = vld [vmem:[%s2919_s28 + $0x128] sm:$0xff] (!%p287_p8) }
  0x3c   : > { %1195 = vmatprep.subr.bf16.mxu0 (!%p287_p8), %v2567_v8  ;;  %v2573_v20 = vcombine.high (!%p287_p8), %v350_v16, %v382_v17  ;;  %1235 = vmatprep.subr.bf16.mxu1 (!%p287_p8), %v2569_v13  ;;  %v2572_v36 = vcombine.low (!%p287_p8), %v350_v16, %v382_v17  ;;  %v2575_v37 = vcombine.high (!%p287_p8), %v351_v27, %v383_v28  ;;  %v353_v46 = vld [vmem:[%s2919_s28 + $0x30] sm:$0xff] (!%p287_p8)  ;;  %v354_v50 = vld [vmem:[%s2919_s28 + $0x38] sm:$0xff] (!%p287_p8)  ;;  %v355_v61 = vld [vmem:[%s2919_s28 + $0x40] sm:$0xff] (!%p287_p8) }
  0x3d   : > { %s3150_s26 = smov (!%p320_p9, %s2564_s26), 127  ;;  %1196 = vmatpush1.bf16.xpose.msra.mxu0 %v2566_v9  ;;  %1236 = vmatpush1.bf16.xpose.msra.mxu1 %v2568_v14  ;;  %v2577_v42 = vcombine.high %v352_v33, %v384_v34  ;;  %v385_v47 = vld [vmem:[%s2919_s28 + $0x130] sm:$0xff]  ;;  %v2574_v49 = vcombine.low %v351_v27, %v383_v28  ;;  %v386_v51 = vld [vmem:[%s2919_s28 + $0x138] sm:$0xff]  ;;  %v2576_v54 = vcombine.low %v352_v33, %v384_v34  ;;  %v387_v62 = vld [vmem:[%s2919_s28 + $0x140] sm:$0xff]  ;;  %s3152_s11 = smov (!%p327_p10, %s2713_s11), 1 }
  0x3e   : > { %s2930_s3 = scalar_lea.vmem %s3140_s0, %s3150_s26  ;;  %1275 = vmatprep.subr.bf16.mxu0 %v2571_v19  ;;  %1315 = vmatprep.subr.bf16.mxu1 %v2573_v20  ;;  %v2579_v53 = vcombine.high %v353_v46, %v385_v47  ;;  %v2581_v57 = vcombine.high %v354_v50, %v386_v51  ;;  %v2578_v0 = vcombine.low %v353_v46, %v385_v47  ;;  %v356_v1 = vld [vmem:[%s2919_s28 + $0x48] sm:$0xff]  ;;  %v357_v13 = vld [vmem:[%s2919_s28 + $0x50] sm:$0xff]  ;;  %v358_v19 = vld [vmem:[%s2919_s28 + $0x58] sm:$0xff]  ;;  %s2565_s4 = sshll.u32 %s3152_s11, 1 }
  0x3f   : > { %v339_v18 = vld [vmem:[%s2930_s3] sm:$0xff]  ;;  %v340_v23 = vld [vmem:[%s2930_s3 + $0x8] sm:$0xff]  ;;  %v341_v58 = vld [vmem:[%s2930_s3 + $0x10] sm:$0xff]  ;;  %v2583_v4 = vcombine.high %v355_v61, %v387_v62  ;;  %v2580_v5 = vcombine.low %v354_v50, %v386_v51  ;;  %s3118_s7 = scalar_lea.vmem %s3142_s2, %s2565_s4 }
  0x40   : > { %v419_v21 = vcombine.high %v339_v18, %v339_v18  ;;  %v426_v22 = vrot.slane %v339_v18, %v2932_v15  ;;  %v475_v29 = vrot.slane %v340_v23, %v2932_v15  ;;  %v468_v41 = vcombine.high %v340_v23, %v340_v23  ;;  %v388_v2 = vld [vmem:[%s2919_s28 + $0x148] sm:$0xff]  ;;  %v389_v14 = vld [vmem:[%s2919_s28 + $0x150] sm:$0xff]  ;;  %v390_v20 = vld [vmem:[%s2919_s28 + $0x158] sm:$0xff] }
  0x41   : > { %v524_v63 = vrot.slane %v341_v58, %v2932_v15  ;;  %v517_v8 = vcombine.high %v341_v58, %v341_v58  ;;  %v2585_v9 = vcombine.high %v356_v1, %v388_v2  ;;  %v344_v10 = vld [vmem:[%s2930_s3 + $0x28] sm:$0xff]  ;;  %v2582_v18 = vcombine.low %v355_v61, %v387_v62  ;;  %v346_v46 = vld [vmem:[%s2930_s3 + $0x38] sm:$0xff] }
  0x42   : > { %v434_v24 = vcombine.high %v426_v22, %v426_v22  ;;  %v442_v25 = vrot.slane %v426_v22, %v2932_v15  ;;  %v433_v26 = vrot.slane %v419_v21, %v2932_v15  ;;  %v483_v40 = vcombine.high %v475_v29, %v475_v29 }
  0x43   : > { %v482_v48 = vrot.slane %v468_v41, %v2932_v15  ;;  %v491_v59 = vrot.slane %v475_v29, %v2932_v15  ;;  %v532_v7 = vcombine.high %v524_v63, %v524_v63  ;;  %v531_v16 = vrot.slane %v517_v8, %v2932_v15  ;;  %v391_v41 = vld [vmem:[%s2919_s28 + $0x160] sm:$0xff] }
  0x44   : > { %v456_v30 = vrot.slane %v434_v24, %v2932_v15  ;;  %v435_v32 = vcombine.high %v433_v26, %v433_v26  ;;  %v464_v35 = vcombine.high %v442_v25, %v442_v25  ;;  %v449_v44 = vrot.slane %v433_v26, %v2932_v15  ;;  %v345_v26 = vld [vmem:[%s2930_s3 + $0x30] sm:$0xff] }
  0x45   : > { %v505_v45 = vrot.slane %v483_v40, %v2932_v15  ;;  %v484_v56 = vcombine.high %v482_v48, %v482_v48  ;;  %v513_v3 = vcombine.high %v491_v59, %v491_v59  ;;  %v498_v11 = vrot.slane %v482_v48, %v2932_v15  ;;  %v359_v40 = vld [vmem:[%s2919_s28 + $0x60] sm:$0xff]  ;;  %v360_v48 = vld [vmem:[%s2919_s28 + $0x68] sm:$0xff] }
  0x46   : > { %1227 = vmatprep.mubr.bf16.mxu0 %v456_v30  ;;  %v466_v38 = vcombine.high %v456_v30, %v456_v30  ;;  %v463_v39 = vrot.slane %v435_v32, %v2932_v15  ;;  %v465_v52 = vcombine.high %v449_v44, %v449_v44  ;;  %v554_v12 = vrot.slane %v532_v7, %v2932_v15  ;;  %v342_v30 = vld [vmem:[%s2930_s3 + $0x18] sm:$0xff] }
  0x47   : > { %1228 = vmatmul.mubr.bf16.vlgmr.msra.gmra.mrb[0].mxu0 %v442_v25  ;;  %v515_v55 = vcombine.high %v505_v45, %v505_v45  ;;  %v512_v60 = vrot.slane %v484_v56, %v2932_v15  ;;  %v671_v17 = vrot.slane %v344_v10, %v2932_v15  ;;  %v664_v21 = vcombine.high %v344_v10, %v344_v10  ;;  %v362_v10 = vld [vmem:[%s2919_s28 + $0x78] sm:$0xff] }
  0x48   : > { %1267 = vmatprep.mubr.bf16.mxu1 %v466_v38  ;;  %1276 = vmatpush1.bf16.xpose.msra.mxu0 %v2570_v31  ;;  %v467_v43 = vcombine.high %v463_v39, %v463_v39  ;;  %v514_v22 = vcombine.high %v498_v11, %v498_v11  ;;  %v2587_v23 = vcombine.high %v357_v13, %v389_v14 }
  0x49   : > { %1268 = vmatmul.mubr.bf16.vlgmr.msra.gmra.mrb[0].mxu1 %v464_v35  ;;  %1307 = vmatprep.mubr.bf16.mxu0 %v463_v39  ;;  %v516_v6 = vcombine.high %v512_v60, %v512_v60  ;;  %v679_v24 = vcombine.high %v671_v17, %v671_v17  ;;  %v2973_v25 = vrot.slane %v671_v17, %v2932_v15 }
  0x4a   : > { %1316 = vmatpush1.bf16.xpose.msra.mxu1 %v2572_v36  ;;  %1355 = vmatprep.subr.bf16.mxu0 %v2575_v37  ;;  %v2584_v27 = vcombine.low %v356_v1, %v388_v2  ;;  %v564_v28 = vcombine.high %v554_v12, %v554_v12  ;;  %v533_v29 = vcombine.high %v531_v16, %v531_v16 }
  0x4b   : > { %1347 = vmatprep.mubr.bf16.mxu1 %v467_v43  ;;  %1395 = vmatprep.subr.bf16.mxu1 %v2577_v42  ;;  %v678_v31 = vrot.slane %v664_v21, %v2932_v15  ;;  %v2589_v32 = vcombine.high %v358_v19, %v390_v20  ;;  %v2979_v33 = vrot.slane %v679_v24, %v2932_v15 }
  0x4c   : > { %v720_v36 = vrot.slane %v345_v26, %v2932_v15  ;;  %v540_v37 = vrot.slane %v524_v63, %v2932_v15  ;;  %v2987_v38 = vrot.slane %v342_v30, %v2932_v15  ;;  %v561_v39 = vrot.slane %v533_v29, %v2932_v15 }
  0x4d   : > { %v680_v34 = vcombine.high %v678_v31, %v678_v31  ;;  %v2982_v35 = vrot.slane %v678_v31, %v2932_v15  ;;  %v2586_v47 = vcombine.low %v357_v13, %v389_v14  ;;  %v769_v58 = vrot.slane %v346_v46, %v2932_v15  ;;  %v396_v31 = vld [vmem:[%s2919_s28 + $0x188] sm:$0xff] }
  0x4e   : > { %v728_v43 = vcombine.high %v720_v36, %v720_v36  ;;  %v562_v51 = vcombine.high %v540_v37, %v540_v37  ;;  %v565_v56 = vcombine.high %v561_v39, %v561_v39  ;;  %v547_v1 = vrot.slane %v531_v16, %v2932_v15 }
  0x4f   : > { %1308 = vmatmul.mubr.bf16.vlgmr.msra.gmra.mrb[4].mxu0 %v449_v44  ;;  %v2993_v42 = vrot.slane %v680_v34, %v2932_v15  ;;  %v2996_v44 = vrot.slane %v720_v36, %v2932_v15  ;;  %v777_v62 = vcombine.high %v769_v58, %v769_v58  ;;  %v3012_v63 = vrot.slane %v769_v58, %v2932_v15 }
  0x50   : > { %1356 = vmatpush1.bf16.xpose.msra.mxu0 %v2574_v49  ;;  %1387 = vmatprep.mubr.bf16.mxu0 %v505_v45  ;;  %v713_v45 = vcombine.high %v345_v26, %v345_v26  ;;  %v392_v49 = vld [vmem:[%s2919_s28 + $0x168] sm:$0xff]  ;;  %v3002_v50 = vrot.slane %v728_v43, %v2932_v15  ;;  %v563_v14 = vcombine.high %v547_v1, %v547_v1  ;;  %v363_v26 = vld [vmem:[%s2919_s28 + $0x80] sm:$0xff] }
  0x51   : > { %1348 = vmatmul.mubr.bf16.vlgmr.msra.gmra.mrb[4].mxu1 %v465_v52  ;;  %1435 = vmatprep.subr.bf16.mxu0 %v2579_v53  ;;  %v2591_v52 = vcombine.high %v359_v40, %v391_v41  ;;  %v581_v53 = vcombine.high %v2987_v38, %v2987_v38  ;;  %v3023_v7 = vrot.slane %v777_v62, %v2932_v15  ;;  %v399_v62 = vld [vmem:[%s2919_s28 + $0x1a0] sm:$0xff] }
  0x52   : > { %1396 = vmatpush1.bf16.xpose.msra.mxu1 %v2576_v54  ;;  %1427 = vmatprep.mubr.bf16.mxu1 %v515_v55  ;;  %v727_v54 = vrot.slane %v713_v45, %v2932_v15  ;;  %v2588_v55 = vcombine.low %v358_v19, %v390_v20  ;;  %v2592_v17 = vcombine.low %v360_v48, %v392_v49  ;;  %v365_v45 = vld [vmem:[%s2919_s28 + $0x90] sm:$0xff] }
  0x53   : > { %1475 = vmatprep.subr.bf16.mxu1 %v2581_v57  ;;  %v566_v57 = vcombine.high %v342_v30, %v342_v30  ;;  %v603_v2 = vrot.slane %v581_v53, %v2932_v15  ;;  %v364_v30 = vld [vmem:[%s2919_s28 + $0x88] sm:$0xff] }
  0x54   : > { %v3009_v61 = vrot.slane %v727_v54, %v2932_v15 }
  0x57   : > { %1388 = vmatmul.mubr.bf16.vlgmr.msra.gmra.mrb[8].mxu0 %v491_v59  ;;  %v2593_v59 = vcombine.high %v360_v48, %v392_v49  ;;  %v366_v49 = vld [vmem:[%s2919_s28 + $0x98] sm:$0xff] }
  0x58   : > { %1436 = vmatpush1.bf16.xpose.msra.mxu0 %v2578_v0  ;;  %1467 = vmatprep.mubr.bf16.mxu0 %v512_v60  ;;  %v729_v60 = vcombine.high %v727_v54, %v727_v54  ;;  %v762_v0 = vcombine.high %v346_v46, %v346_v46  ;;  %v397_v46 = vld [vmem:[%s2919_s28 + $0x190] sm:$0xff]  ;;  %v2600_v54 = vcombine.low %v364_v30, %v396_v31 }
  0x59   : > { %1428 = vmatmul.mubr.bf16.vlgmr.msra.gmra.mrb[8].mxu1 %v513_v3  ;;  %1515 = vmatprep.subr.bf16.mxu0 %v2583_v4  ;;  %v361_v4 = vld [vmem:[%s2919_s28 + $0x70] sm:$0xff]  ;;  %v2603_v53 = vcombine.high %v365_v45, %v397_v46 }
  0x5a   : > { %1476 = vmatpush1.bf16.xpose.msra.mxu1 %v2580_v5  ;;  %1507 = vmatprep.mubr.bf16.mxu1 %v516_v6  ;;  %v3017_v3 = vrot.slane %v729_v60, %v2932_v15  ;;  %v393_v5 = vld [vmem:[%s2919_s28 + $0x170] sm:$0xff]  ;;  %v580_v6 = vrot.slane %v566_v57, %v2932_v15  ;;  %v776_v8 = vrot.slane %v762_v0, %v2932_v15  ;;  %v367_v60 = vld [vmem:[%s2919_s28 + $0xa0] sm:$0xff] }
  0x5b   : > { %1555 = vmatprep.subr.bf16.mxu1 %v2585_v9  ;;  %v2590_v9 = vcombine.low %v359_v40, %v391_v41  ;;  %v2595_v16 = vcombine.high %v361_v4, %v393_v5  ;;  %v2594_v29 = vcombine.low %v361_v4, %v393_v5  ;;  %v2601_v40 = vcombine.high %v364_v30, %v396_v31 }
  0x5c   : > { %v3029_v13 = vrot.slane %v776_v8, %v2932_v15  ;;  %v582_v19 = vcombine.high %v580_v6, %v580_v6  ;;  %v596_v41 = vrot.slane %v580_v6, %v2932_v15  ;;  %v2602_v0 = vcombine.low %v365_v45, %v397_v46  ;;  %v375_v45 = vld [vmem:[%s2919_s28 + $0xe0] sm:$0xff] }
  0x5d   : > { %v2607_v5 = vcombine.high %v367_v60, %v399_v62  ;;  %v407_v46 = vld [vmem:[%s2919_s28 + $0x1e0] sm:$0xff] }
  0x5e   : > { %v610_v24 = vrot.slane %v582_v19, %v2932_v15 }
  0x5f   : > { %1468 = vmatmul.mubr.bf16.vlgmr.msra.gmra.mrb[12].mxu0 %v498_v11  ;;  %v394_v11 = vld [vmem:[%s2919_s28 + $0x178] sm:$0xff] }
  0x60   : > { %1516 = vmatpush1.bf16.xpose.msra.mxu0 %v2582_v18  ;;  %1547 = vmatprep.mubr.bf16.mxu0 %v554_v12  ;;  %v778_v12 = vcombine.high %v776_v8, %v776_v8  ;;  %v613_v18 = vcombine.high %v603_v2, %v603_v2  ;;  %v2597_v21 = vcombine.high %v362_v10, %v394_v11 }
  0x61   : > { %1508 = vmatmul.mubr.bf16.vlgmr.msra.gmra.mrb[12].mxu1 %v514_v22  ;;  %1595 = vmatprep.subr.bf16.mxu0 %v2587_v23  ;;  %v343_v22 = vld [vmem:[%s2930_s3 + $0x20] sm:$0xff]  ;;  %v589_v23 = vrot.slane %v2987_v38, %v2932_v15  ;;  %v2596_v36 = vcombine.low %v362_v10, %v394_v11  ;;  %v369_v11 = vld [vmem:[%s2919_s28 + $0xb0] sm:$0xff] }
  0x62   : > { %1556 = vmatpush1.bf16.xpose.msra.mxu1 %v2584_v27  ;;  %1587 = vmatprep.mubr.bf16.mxu1 %v564_v28  ;;  %v3032_v20 = vrot.slane %v778_v12, %v2932_v15  ;;  %v395_v27 = vld [vmem:[%s2919_s28 + $0x180] sm:$0xff]  ;;  %v622_v28 = vrot.slane %v343_v22, %v2932_v15  ;;  %v401_v12 = vld [vmem:[%s2919_s28 + $0x1b0] sm:$0xff] }
  0x63   : > { %1635 = vmatprep.subr.bf16.mxu1 %v2589_v32  ;;  %v611_v32 = vcombine.high %v589_v23, %v589_v23  ;;  %v2599_v34 = vcombine.high %v363_v26, %v395_v27  ;;  %v2598_v48 = vcombine.low %v363_v26, %v395_v27  ;;  %v2611_v19 = vcombine.high %v369_v11, %v401_v12  ;;  %v372_v27 = vld [vmem:[%s2919_s28 + $0xc8] sm:$0xff] }
  0x64   : > { %v630_v38 = vcombine.high %v622_v28, %v622_v28  ;;  %v638_v58 = vrot.slane %v622_v28, %v2932_v15  ;;  %v2610_v26 = vcombine.low %v369_v11, %v401_v12  ;;  %v404_v28 = vld [vmem:[%s2919_s28 + $0x1c8] sm:$0xff] }
  0x66   : > { %v652_v43 = vrot.slane %v630_v38, %v2932_v15  ;;  %v660_v4 = vcombine.high %v638_v58, %v638_v58  ;;  %v374_v38 = vld [vmem:[%s2919_s28 + $0xd8] sm:$0xff] }
  0x67   : > { %1548 = vmatmul.mubr.bf16.vlgmr.msra.gmra.mrb[16].mxu0 %v540_v37  ;;  %v614_v37 = vcombine.high %v610_v24, %v610_v24 }
  0x68   : > { %1596 = vmatpush1.bf16.xpose.msra.mxu0 %v2586_v47  ;;  %1627 = vmatprep.mubr.bf16.mxu0 %v561_v39  ;;  %v615_v39 = vcombine.high %v343_v22, %v343_v22  ;;  %v711_v22 = vcombine.high %v2979_v33, %v2979_v33 }
  0x69   : > { %1588 = vmatmul.mubr.bf16.vlgmr.msra.gmra.mrb[16].mxu1 %v562_v51  ;;  %1675 = vmatprep.subr.bf16.mxu0 %v2591_v52  ;;  %v398_v51 = vld [vmem:[%s2919_s28 + $0x198] sm:$0xff]  ;;  %v612_v52 = vcombine.high %v596_v41, %v596_v41 }
  0x6a   : > { %1636 = vmatpush1.bf16.xpose.msra.mxu1 %v2588_v55  ;;  %1667 = vmatprep.mubr.bf16.mxu1 %v565_v56  ;;  %v629_v47 = vrot.slane %v615_v39, %v2932_v15  ;;  %v662_v55 = vcombine.high %v652_v43, %v652_v43  ;;  %v2605_v57 = vcombine.high %v366_v49, %v398_v51  ;;  %v406_v39 = vld [vmem:[%s2919_s28 + $0x1d8] sm:$0xff] }
  0x6b   : > { %1715 = vmatprep.subr.bf16.mxu1 %v2593_v59  ;;  %v2604_v6 = vcombine.low %v366_v49, %v398_v51  ;;  %v408_v49 = vld [vmem:[%s2919_s28 + $0x1e8] sm:$0xff]  ;;  %v758_v51 = vcombine.high %v2996_v44, %v2996_v44 }
  0x6c   : > { %v631_v56 = vcombine.high %v629_v47, %v629_v47  ;;  %v645_v10 = vrot.slane %v629_v47, %v2932_v15 }
  0x6e   : > { %v659_v59 = vrot.slane %v631_v56, %v2932_v15  ;;  %v2622_v56 = vcombine.low %v375_v45, %v407_v46 }
  0x6f   : > { %1628 = vmatmul.mubr.bf16.vlgmr.msra.gmra.mrb[20].mxu0 %v547_v1  ;;  %v368_v1 = vld [vmem:[%s2919_s28 + $0xa8] sm:$0xff] }
  0x70   : > { %1676 = vmatpush1.bf16.xpose.msra.mxu0 %v2590_v9  ;;  %1707 = vmatprep.mubr.bf16.mxu0 %v603_v2  ;;  %v400_v2 = vld [vmem:[%s2919_s28 + $0x1a8] sm:$0xff]  ;;  %v663_v8 = vcombine.high %v659_v59, %v659_v59 }
  0x71   : > { %1668 = vmatmul.mubr.bf16.vlgmr.msra.gmra.mrb[20].mxu1 %v563_v14  ;;  %1755 = vmatprep.subr.bf16.mxu0 %v2595_v16  ;;  %v2609_v9 = vcombine.high %v368_v1, %v400_v2  ;;  %v2606_v14 = vcombine.low %v367_v60, %v399_v62  ;;  %v370_v16 = vld [vmem:[%s2919_s28 + $0xb8] sm:$0xff] }
  0x72   : > { %1716 = vmatpush1.bf16.xpose.msra.mxu1 %v2592_v17  ;;  %1747 = vmatprep.mubr.bf16.mxu1 %v613_v18  ;;  %v402_v17 = vld [vmem:[%s2919_s28 + $0x1b8] sm:$0xff]  ;;  %v661_v18 = vcombine.high %v645_v10, %v645_v10 }
  0x73   : > { %1795 = vmatprep.subr.bf16.mxu1 %v2597_v21  ;;  %v2608_v21 = vcombine.low %v368_v1, %v400_v2  ;;  %v2613_v15 = vcombine.high %v370_v16, %v402_v17  ;;  %v2612_v31 = vcombine.low %v370_v16, %v402_v17  ;;  %v807_v1 = vcombine.high %v3012_v63, %v3012_v63 }
  0x77   : > { %1708 = vmatmul.mubr.bf16.vlgmr.msra.gmra.mrb[24].mxu0 %v589_v23  ;;  %v371_v23 = vld [vmem:[%s2919_s28 + $0xc0] sm:$0xff] }
  0x78   : > { %1756 = vmatpush1.bf16.xpose.msra.mxu0 %v2594_v29  ;;  %1787 = vmatprep.mubr.bf16.mxu0 %v610_v24  ;;  %v403_v24 = vld [vmem:[%s2919_s28 + $0x1c0] sm:$0xff]  ;;  %v709_v29 = vcombine.high %v2973_v25, %v2973_v25 }
  0x79   : > { %1748 = vmatmul.mubr.bf16.vlgmr.msra.gmra.mrb[24].mxu1 %v611_v32  ;;  %1835 = vmatprep.subr.bf16.mxu0 %v2599_v34  ;;  %v2615_v30 = vcombine.high %v371_v23, %v403_v24  ;;  %v2617_v32 = vcombine.high %v372_v27, %v404_v28  ;;  %v373_v34 = vld [vmem:[%s2919_s28 + $0xd0] sm:$0xff] }
  0x7a   : > { %1796 = vmatpush1.bf16.xpose.msra.mxu1 %v2596_v36  ;;  %1827 = vmatprep.mubr.bf16.mxu1 %v614_v37  ;;  %v405_v36 = vld [vmem:[%s2919_s28 + $0x1d0] sm:$0xff]  ;;  %v2614_v37 = vcombine.low %v371_v23, %v403_v24 }
  0x7b   : > { %1875 = vmatprep.subr.bf16.mxu1 %v2601_v40  ;;  %v710_v40 = vcombine.high %v2982_v35, %v2982_v35  ;;  %v2618_v47 = vcombine.low %v373_v34, %v405_v36 }
  0x7f   : > { %1788 = vmatmul.mubr.bf16.vlgmr.msra.gmra.mrb[28].mxu0 %v596_v41  ;;  %v2616_v41 = vcombine.low %v372_v27, %v404_v28 }
  0x80   : > { %1836 = vmatpush1.bf16.xpose.msra.mxu0 %v2598_v48  ;;  %1867 = vmatprep.mubr.bf16.mxu0 %v652_v43  ;;  %v2621_v43 = vcombine.high %v374_v38, %v406_v39  ;;  %v376_v48 = vld [vmem:[%s2919_s28 + $0xe8] sm:$0xff] }
  0x81   : > { %1828 = vmatmul.mubr.bf16.vlgmr.msra.gmra.mrb[28].mxu1 %v612_v52  ;;  %1915 = vmatprep.subr.bf16.mxu0 %v2603_v53  ;;  %v2620_v52 = vcombine.low %v374_v38, %v406_v39  ;;  %v2625_v53 = vcombine.high %v376_v48, %v408_v49  ;;  %v2624_v62 = vcombine.low %v376_v48, %v408_v49 }
  0x82   : > { %1876 = vmatpush1.bf16.xpose.msra.mxu1 %v2600_v54  ;;  %1907 = vmatprep.mubr.bf16.mxu1 %v662_v55  ;;  %v377_v54 = vld [vmem:[%s2919_s28 + $0xf0] sm:$0xff] }
  0x83   : > { %1955 = vmatprep.subr.bf16.mxu1 %v2605_v57  ;;  %v409_v55 = vld [vmem:[%s2919_s28 + $0x1f0] sm:$0xff]  ;;  %v378_v57 = vld [vmem:[%s2919_s28 + $0xf8] sm:$0xff] }
  0x84   : > { %v2627_v60 = vcombine.high %v377_v54, %v409_v55 }
  0x87   : > { %1868 = vmatmul.mubr.bf16.vlgmr.msra.gmra.mrb[32].mxu0 %v638_v58  ;;  %v410_v58 = vld [vmem:[%s2919_s28 + $0x1f8] sm:$0xff] }
  0x88   : > { %1916 = vmatpush1.bf16.xpose.msra.mxu0 %v2602_v0  ;;  %1947 = vmatprep.mubr.bf16.mxu0 %v659_v59  ;;  %v759_v59 = vcombine.high %v3009_v61, %v3009_v61  ;;  %v2626_v0 = vcombine.low %v377_v54, %v409_v55  ;;  %v2628_v2 = vcombine.low %v378_v57, %v410_v58 }
  0x89   : > { %1908 = vmatmul.mubr.bf16.vlgmr.msra.gmra.mrb[32].mxu1 %v660_v4  ;;  %1995 = vmatprep.subr.bf16.mxu0 %v2607_v5  ;;  %v810_v4 = vcombine.high %v3032_v20, %v3032_v20 }
  0x8a   : > { %1956 = vmatpush1.bf16.xpose.msra.mxu1 %v2604_v6  ;;  %1987 = vmatprep.mubr.bf16.mxu1 %v663_v8 }
  0x8b   : > { %2035 = vmatprep.subr.bf16.mxu1 %v2609_v9 }
  0x8f   : > { %1948 = vmatmul.mubr.bf16.vlgmr.msra.gmra.mrb[36].mxu0 %v645_v10 }
  0x90   : > { %1996 = vmatpush1.bf16.xpose.msra.mxu0 %v2606_v14  ;;  %2027 = vmatprep.mubr.bf16.mxu0 %v2979_v33  ;;  %v712_v33 = vcombine.high %v2993_v42, %v2993_v42 }
  0x91   : > { %1988 = vmatmul.mubr.bf16.vlgmr.msra.gmra.mrb[36].mxu1 %v661_v18  ;;  %2075 = vmatprep.subr.bf16.mxu0 %v2611_v19 }
  0x92   : > { %2036 = vmatpush1.bf16.xpose.msra.mxu1 %v2608_v21  ;;  %2067 = vmatprep.mubr.bf16.mxu1 %v711_v22 }
  0x93   : > { %2115 = vmatprep.subr.bf16.mxu1 %v2613_v15 }
  0x97   : > { %2028 = vmatmul.mubr.bf16.vlgmr.msra.gmra.mrb[40].mxu0 %v2973_v25  ;;  %v2619_v25 = vcombine.high %v373_v34, %v405_v36 }
  0x98   : > { %2076 = vmatpush1.bf16.xpose.msra.mxu0 %v2610_v26  ;;  %2107 = vmatprep.mubr.bf16.mxu0 %v2993_v42  ;;  %v760_v42 = vcombine.high %v3002_v50, %v3002_v50 }
  0x99   : > { %2068 = vmatmul.mubr.bf16.vlgmr.msra.gmra.mrb[40].mxu1 %v709_v29  ;;  %2155 = vmatprep.subr.bf16.mxu0 %v2615_v30 }
  0x9a   : > { %2116 = vmatpush1.bf16.xpose.msra.mxu1 %v2612_v31  ;;  %2147 = vmatprep.mubr.bf16.mxu1 %v712_v33 }
  0x9b   : > { %2195 = vmatprep.subr.bf16.mxu1 %v2617_v32 }
  0x9f   : > { %2108 = vmatmul.mubr.bf16.vlgmr.msra.gmra.mrb[44].mxu0 %v2982_v35  ;;  %v2623_v35 = vcombine.high %v375_v45, %v407_v46 }
  0xa0   : > { %2156 = vmatpush1.bf16.xpose.msra.mxu0 %v2614_v37  ;;  %2187 = vmatprep.mubr.bf16.mxu0 %v3002_v50  ;;  %v761_v50 = vcombine.high %v3017_v3, %v3017_v3 }
  0xa1   : > { %2148 = vmatmul.mubr.bf16.vlgmr.msra.gmra.mrb[44].mxu1 %v710_v40  ;;  %2235 = vmatprep.subr.bf16.mxu0 %v2619_v25 }
  0xa2   : > { %2196 = vmatpush1.bf16.xpose.msra.mxu1 %v2616_v41  ;;  %2227 = vmatprep.mubr.bf16.mxu1 %v760_v42 }
  0xa3   : > { %2275 = vmatprep.subr.bf16.mxu1 %v2621_v43 }
  0xa7   : > { %2188 = vmatmul.mubr.bf16.vlgmr.msra.gmra.mrb[48].mxu0 %v2996_v44  ;;  %v809_v44 = vcombine.high %v3023_v7, %v3023_v7 }
  0xa8   : > { %2236 = vmatpush1.bf16.xpose.msra.mxu0 %v2618_v47  ;;  %2267 = vmatprep.mubr.bf16.mxu0 %v3017_v3  ;;  %v2629_v3 = vcombine.high %v378_v57, %v410_v58 }
  0xa9   : > { %2228 = vmatmul.mubr.bf16.vlgmr.msra.gmra.mrb[48].mxu1 %v758_v51  ;;  %2315 = vmatprep.subr.bf16.mxu0 %v2623_v35 }
  0xaa   : > { %2276 = vmatpush1.bf16.xpose.msra.mxu1 %v2620_v52  ;;  %2307 = vmatprep.mubr.bf16.mxu1 %v761_v50 }
  0xab   : > { %2355 = vmatprep.subr.bf16.mxu1 %v2625_v53 }
  0xaf   : > { %2268 = vmatmul.mubr.bf16.vlgmr.msra.gmra.mrb[52].mxu0 %v3009_v61  ;;  %v808_v61 = vcombine.high %v3029_v13, %v3029_v13 }
  0xb0   : > { %2316 = vmatpush1.bf16.xpose.msra.mxu0 %v2622_v56  ;;  %2347 = vmatprep.mubr.bf16.mxu0 %v3023_v7 }
  0xb1   : > { %2308 = vmatmul.mubr.bf16.vlgmr.msra.gmra.mrb[52].mxu1 %v759_v59  ;;  %2395 = vmatprep.subr.bf16.mxu0 %v2627_v60 }
  0xb2   : > { %2356 = vmatpush1.bf16.xpose.msra.mxu1 %v2624_v62  ;;  %2387 = vmatprep.mubr.bf16.mxu1 %v809_v44 }
  0xb3   : > { %2435 = vmatprep.subr.bf16.mxu1 %v2629_v3 }
  0xb7   : > { %2348 = vmatmul.mubr.bf16.vlgmr.msra.gmra.mrb[56].mxu0 %v3012_v63  ;;  %v2724_v63 = vmov 0.0  }
  0xb8   : > { %2396 = vmatpush1.bf16.xpose.msra.mxu0 %v2626_v0  ;;  %2427 = vmatprep.mubr.bf16.mxu0 %v3032_v20  ;;  %337 = vst.msk [vmem:[%s3118_s7] sm:$0x3] %vm336_vm0, %v2724_v63 }
  0xb9   : > { %2388 = vmatmul.mubr.bf16.vlgmr.msra.gmra.mrb[56].mxu1 %v807_v1 }
  0xba   : > { %2436 = vmatpush1.bf16.xpose.msra.mxu1 %v2628_v2  ;;  %2467 = vmatprep.mubr.bf16.mxu1 %v810_v4 }
  0xbf   : > { %2428 = vmatmul.mubr.bf16.vlgmr.msra.gmra.mrb[60].mxu0 %v3029_v13 }
  0xc1   : > { %2468 = vmatmul.mubr.bf16.vlgmr.msra.gmra.mrb[60].mxu1 %v808_v61 }
 0x11a   : > { %v1229_v7 = vpop.f32.mrb[0].mxu0 }
 0x11b   : > { %v1231_v20 = vpop.f32.mrb[1].mxu0 }
 0x11c   : > { %v1232_v5 = vpop.f32.mrb[2].mxu0  ;;  %v1269_v6 = vpop.f32.mrb[0].mxu1 }
 0x11d   : > { %v1270_v8 = vadd.f32 %v1269_v6, %v1229_v7  ;;  %v1233_v13 = vpop.f32.mrb[3].mxu0  ;;  %v1271_v9 = vpop.f32.mrb[1].mxu1 }
 0x11e   : > { %v1272_v10 = vpop.f32.mrb[2].mxu1 }
 0x11f   : > { %v1273_v11 = vpop.f32.mrb[3].mxu1 }
 0x122   : > { %v1309_v12 = vpop.f32.mrb[4].mxu0 }
 0x123   : > { %v1310_v14 = vadd.f32 %v1309_v12, %v1270_v8  ;;  %v1311_v16 = vpop.f32.mrb[5].mxu0 }
 0x124   : > { %v1312_v17 = vpop.f32.mrb[6].mxu0  ;;  %v1349_v18 = vpop.f32.mrb[4].mxu1 }
 0x125   : > { %v1350_v19 = vadd.f32 %v1349_v18, %v1310_v14  ;;  %v1313_v21 = vpop.f32.mrb[7].mxu0  ;;  %v1351_v22 = vpop.f32.mrb[5].mxu1 }
 0x126   : > { %v1352_v15 = vpop.f32.mrb[6].mxu1 }
 0x127   : > { %v1353_v23 = vpop.f32.mrb[7].mxu1 }
 0x12a   : > { %v1389_v24 = vpop.f32.mrb[8].mxu0 }
 0x12b   : > { %v1390_v26 = vadd.f32 %v1389_v24, %v1350_v19  ;;  %v1391_v27 = vpop.f32.mrb[9].mxu0 }
 0x12c   : > { %v1392_v28 = vpop.f32.mrb[10].mxu0  ;;  %v1429_v29 = vpop.f32.mrb[8].mxu1 }
 0x12d   : > { %v1430_v30 = vadd.f32 %v1429_v29, %v1390_v26  ;;  %v1393_v31 = vpop.f32.mrb[11].mxu0  ;;  %v1431_v33 = vpop.f32.mrb[9].mxu1 }
 0x12e   : > { %v1432_v32 = vpop.f32.mrb[10].mxu1 }
 0x12f   : > { %v1433_v34 = vpop.f32.mrb[11].mxu1 }
 0x132   : > { %v1469_v36 = vpop.f32.mrb[12].mxu0 }
 0x133   : > { %v1470_v37 = vadd.f32 %v1469_v36, %v1430_v30  ;;  %v1471_v38 = vpop.f32.mrb[13].mxu0 }
 0x134   : > { %v1472_v39 = vpop.f32.mrb[14].mxu0  ;;  %v1509_v40 = vpop.f32.mrb[12].mxu1 }
 0x135   : > { %v1510_v25 = vadd.f32 %v1509_v40, %v1470_v37  ;;  %v1473_v41 = vpop.f32.mrb[15].mxu0  ;;  %v1511_v42 = vpop.f32.mrb[13].mxu1 }
 0x136   : > { %v1512_v43 = vpop.f32.mrb[14].mxu1 }
 0x137   : > { %v1513_v45 = vpop.f32.mrb[15].mxu1 }
 0x13a   : > { %v1549_v46 = vpop.f32.mrb[16].mxu0 }
 0x13b   : > { %v1550_v47 = vadd.f32 %v1549_v46, %v1510_v25  ;;  %v1551_v48 = vpop.f32.mrb[17].mxu0 }
 0x13c   : > { %v1552_v49 = vpop.f32.mrb[18].mxu0  ;;  %v1589_v51 = vpop.f32.mrb[16].mxu1 }
 0x13d   : > { %v1590_v35 = vadd.f32 %v1589_v51, %v1550_v47  ;;  %v1553_v52 = vpop.f32.mrb[19].mxu0  ;;  %v1591_v50 = vpop.f32.mrb[17].mxu1 }
 0x13e   : > { %v1592_v53 = vpop.f32.mrb[18].mxu1 }
 0x13f   : > { %v1593_v54 = vpop.f32.mrb[19].mxu1 }
 0x142   : > { %v1629_v55 = vpop.f32.mrb[20].mxu0 }
 0x143   : > { %v1630_v56 = vadd.f32 %v1629_v55, %v1590_v35  ;;  %v1631_v57 = vpop.f32.mrb[21].mxu0 }
 0x144   : > { %v1632_v58 = vpop.f32.mrb[22].mxu0  ;;  %v1669_v59 = vpop.f32.mrb[20].mxu1 }
 0x145   : > { %v1670_v60 = vadd.f32 %v1669_v59, %v1630_v56  ;;  %v1633_v62 = vpop.f32.mrb[23].mxu0  ;;  %v1671_v44 = vpop.f32.mrb[21].mxu1 }
 0x146   : > { %v1672_v3 = vpop.f32.mrb[22].mxu1 }
 0x147   : > { %v1673_v0 = vpop.f32.mrb[23].mxu1 }
 0x14a   : > { %v1709_v1 = vpop.f32.mrb[24].mxu0 }
 0x14b   : > { %v1710_v2 = vadd.f32 %v1709_v1, %v1670_v60  ;;  %v1711_v4 = vpop.f32.mrb[25].mxu0 }
 0x14c   : > { %v1712_v61 = vpop.f32.mrb[26].mxu0  ;;  %v1749_v63 = vpop.f32.mrb[24].mxu1 }
 0x14d   : > { %v1750_v7 = vadd.f32 %v1749_v63, %v1710_v2  ;;  %v1713_v20 = vpop.f32.mrb[27].mxu0  ;;  %v1751_v5 = vpop.f32.mrb[25].mxu1 }
 0x14e   : > { %v1752_v6 = vpop.f32.mrb[26].mxu1 }
 0x14f   : > { %v1753_v8 = vpop.f32.mrb[27].mxu1 }
 0x152   : > { %v1789_v13 = vpop.f32.mrb[28].mxu0 }
 0x153   : > { %v1790_v9 = vadd.f32 %v1789_v13, %v1750_v7  ;;  %v1791_v10 = vpop.f32.mrb[29].mxu0 }
 0x154   : > { %v1792_v11 = vpop.f32.mrb[30].mxu0  ;;  %v1829_v12 = vpop.f32.mrb[28].mxu1 }
 0x155   : > { %v1830_v14 = vadd.f32 %v1829_v12, %v1790_v9  ;;  %v1793_v16 = vpop.f32.mrb[31].mxu0  ;;  %v1831_v17 = vpop.f32.mrb[29].mxu1 }
 0x156   : > { %v1832_v18 = vpop.f32.mrb[30].mxu1 }
 0x157   : > { %v1833_v19 = vpop.f32.mrb[31].mxu1 }
 0x15a   : > { %v1869_v21 = vpop.f32.mrb[32].mxu0 }
 0x15b   : > { %v1870_v22 = vadd.f32 %v1869_v21, %v1830_v14  ;;  %v1871_v15 = vpop.f32.mrb[33].mxu0 }
 0x15c   : > { %v1872_v23 = vpop.f32.mrb[34].mxu0  ;;  %v1909_v24 = vpop.f32.mrb[32].mxu1 }
 0x15d   : > { %v1910_v26 = vadd.f32 %v1909_v24, %v1870_v22  ;;  %v1873_v27 = vpop.f32.mrb[35].mxu0  ;;  %v1911_v28 = vpop.f32.mrb[33].mxu1 }
 0x15e   : > { %v1912_v29 = vpop.f32.mrb[34].mxu1 }
 0x15f   : > { %v1913_v30 = vpop.f32.mrb[35].mxu1 }
 0x162   : > { %v1949_v31 = vpop.f32.mrb[36].mxu0 }
 0x163   : > { %v1950_v33 = vadd.f32 %v1949_v31, %v1910_v26  ;;  %v1951_v32 = vpop.f32.mrb[37].mxu0  ;;  %v338_v31 = vld [vmem:[%s3118_s7] sm:$0x3] }
 0x164   : > { %v1952_v34 = vpop.f32.mrb[38].mxu0  ;;  %v1989_v36 = vpop.f32.mrb[36].mxu1 }
 0x165   : > { %v1990_v37 = vadd.f32 %v1989_v36, %v1950_v33  ;;  %v1953_v38 = vpop.f32.mrb[39].mxu0  ;;  %v1991_v39 = vpop.f32.mrb[37].mxu1 }
 0x166   : > { %v1992_v40 = vpop.f32.mrb[38].mxu1 }
 0x167   : > { %v1993_v25 = vpop.f32.mrb[39].mxu1 }
 0x16a   : > { %v2029_v41 = vpop.f32.mrb[40].mxu0 }
 0x16b   : > { %v2030_v42 = vadd.f32 %v2029_v41, %v1990_v37  ;;  %v2031_v43 = vpop.f32.mrb[41].mxu0 }
 0x16c   : > { %v2032_v45 = vpop.f32.mrb[42].mxu0  ;;  %v2069_v46 = vpop.f32.mrb[40].mxu1 }
 0x16d   : > { %v2070_v47 = vadd.f32 %v2069_v46, %v2030_v42  ;;  %v2033_v48 = vpop.f32.mrb[43].mxu0  ;;  %v2071_v49 = vpop.f32.mrb[41].mxu1 }
 0x16e   : > { %v2072_v51 = vpop.f32.mrb[42].mxu1 }
 0x16f   : > { %v2073_v35 = vpop.f32.mrb[43].mxu1 }
 0x172   : > { %v2109_v52 = vpop.f32.mrb[44].mxu0 }
 0x173   : > { %v2110_v50 = vadd.f32 %v2109_v52, %v2070_v47  ;;  %v2111_v53 = vpop.f32.mrb[45].mxu0 }
 0x174   : > { %v2112_v54 = vpop.f32.mrb[46].mxu0  ;;  %v2149_v55 = vpop.f32.mrb[44].mxu1 }
 0x175   : > { %v2150_v56 = vadd.f32 %v2149_v55, %v2110_v50  ;;  %v2113_v57 = vpop.f32.mrb[47].mxu0  ;;  %v2151_v58 = vpop.f32.mrb[45].mxu1 }
 0x176   : > { %v2152_v59 = vpop.f32.mrb[46].mxu1 }
 0x177   : > { %v2153_v60 = vpop.f32.mrb[47].mxu1 }
 0x17a   : > { %v2189_v62 = vpop.f32.mrb[48].mxu0 }
 0x17b   : > { %v2190_v44 = vadd.f32 %v2189_v62, %v2150_v56  ;;  %v2191_v3 = vpop.f32.mrb[49].mxu0 }
 0x17c   : > { %v2192_v0 = vpop.f32.mrb[50].mxu0  ;;  %v2229_v1 = vpop.f32.mrb[48].mxu1 }
 0x17d   : > { %v2230_v2 = vadd.f32 %v2229_v1, %v2190_v44  ;;  %v2193_v4 = vpop.f32.mrb[51].mxu0  ;;  %v2231_v61 = vpop.f32.mrb[49].mxu1 }
 0x17e   : > { %v2232_v63 = vpop.f32.mrb[50].mxu1 }
 0x17f   : > { %v2233_v7 = vpop.f32.mrb[51].mxu1 }
 0x182   : > { %v2269_v20 = vpop.f32.mrb[52].mxu0 }
 0x183   : > { %v2270_v5 = vadd.f32 %v2269_v20, %v2230_v2  ;;  %v2271_v6 = vpop.f32.mrb[53].mxu0 }
 0x184   : > { %v2272_v8 = vpop.f32.mrb[54].mxu0  ;;  %v2309_v13 = vpop.f32.mrb[52].mxu1 }
 0x185   : > { %v2310_v9 = vadd.f32 %v2309_v13, %v2270_v5  ;;  %v2273_v10 = vpop.f32.mrb[55].mxu0  ;;  %v2311_v11 = vpop.f32.mrb[53].mxu1 }
 0x186   : > { %v2312_v12 = vpop.f32.mrb[54].mxu1 }
 0x187   : > { %v2313_v14 = vpop.f32.mrb[55].mxu1 }
 0x18a   : > { %v2349_v16 = vpop.f32.mrb[56].mxu0 }
 0x18b   : > { %v2350_v17 = vadd.f32 %v2349_v16, %v2310_v9  ;;  %v2351_v18 = vpop.f32.mrb[57].mxu0 }
 0x18c   : > { %v2352_v19 = vpop.f32.mrb[58].mxu0  ;;  %v2389_v21 = vpop.f32.mrb[56].mxu1 }
 0x18d   : > { %v2390_v22 = vadd.f32 %v2389_v21, %v2350_v17  ;;  %v2353_v15 = vpop.f32.mrb[59].mxu0  ;;  %v2391_v23 = vpop.f32.mrb[57].mxu1 }
 0x18e   : > { %v2392_v24 = vpop.f32.mrb[58].mxu1 }
 0x18f   : > { %v2393_v26 = vpop.f32.mrb[59].mxu1 }
 0x192   : > { %v2429_v27 = vpop.f32.mrb[60].mxu0 }
 0x193   : > { %v2430_v28 = vadd.f32 %v2429_v27, %v2390_v22  ;;  %v2431_v29 = vpop.f32.mrb[61].mxu0 }
 0x194   : > { %v2432_v30 = vpop.f32.mrb[62].mxu0  ;;  %v2469_v33 = vpop.f32.mrb[60].mxu1 }
 0x195   : > { %v2470_v32 = vadd.f32 %v2469_v33, %v2430_v28  ;;  %v2433_v34 = vpop.f32.mrb[63].mxu0  ;;  %v2471_v36 = vpop.f32.mrb[61].mxu1 }
 0x196   : > { %v2472_v37 = vpop.f32.mrb[62].mxu1 }
 0x197   : > { %v2475_v38 = vadd.f32 %v2470_v32, %v338_v31  ;;  %v2473_v39 = vpop.f32.mrb[63].mxu1 }
 0x199   : > { %2477 = vst.msk [vmem:[%s3118_s7] sm:$0x3] %vm336_vm0, %v2475_v38 }
 0x19a PF: > { %s12_s13 = sadd.s32 1, %s2721_s13   ;;  %s3143_s9 = smov %s2709_s10 }
 0x19b   : > { %p9_p11 = scmp.ge.s32.totalorder %s12_s13, 4   ;;  %s3144_s10 = smov %s2775_s17 }
 0x19c   : > { %s3145_s11 = smov %s2717_s12  ;;  %s3146_s12 = smov %s3148_s14 }
 0x19d   :  { %11 = sbr.rel (!%p9_p11) target bundleno = 3 (0x3), region = 93 }

</bundles_post_ra>
